<compile_context>
chip_gen: v5e
topology: v5e:2x2
jax: 0.10.0
libtpu: 0.0.40
codegen_flags: <defaults>
</compile_context>

<pallas_src>
import math
import functools

import jax
import jax.numpy as jnp
from jax import lax
from jax.experimental import pallas as pl
from jax.experimental.pallas import tpu as pltpu

_BBOX_XFORM_CLIP = math.log(1000.0 / 16.0)


# --------------------------------------------------------------------------
# Pallas kernel: fused RPN head (3x3 conv + ReLU + obj/box 1x1) + box decode
# --------------------------------------------------------------------------
def _rpn_head_decode_kernel(H, W, Cin, Cmid, A,
                            xp_ref, wc_ref, bc_ref, wh_ref, bh_ref, anc_ref,
                            out_ref):
    """One image of one pyramid level.

    xp_ref  : (1, H+2, W+2, Cin) bf16   zero-padded NHWC feature map
    wc_ref  : (9*Cin, Cmid)      bf16   3x3 conv weights, tap-major (im2col layout)
    bc_ref  : (1, Cmid)          f32
    wh_ref  : (5*A, Cmid)        bf16   fused [obj | dx | dy | dw | dh] heads (row = channel)
    bh_ref  : (5*A, 1)           f32
    anc_ref : (4*A, H*W)         f32    anchors, rows = [x1_a.., y1_a.., x2_a.., y2_a..]
    out_ref : (1, 5*A, H*W)      f32    rows = [obj_a.., x1_a.., y1_a.., x2_a.., y2_a..]
    """
    xp = xp_ref[0]                                          # (H+2, W+2, Cin) bf16

    # --- im2col: pack the 9 taps into the contraction dim -> a single MXU matmul
    cols = []
    for ky in range(3):
        for kx in range(3):
            cols.append(xp[ky:ky + H, kx:kx + W, :].reshape(H * W, Cin))
    patch = jnp.concatenate(cols, axis=-1)                  # (H*W, 9*Cin) bf16

    t = jnp.dot(patch, wc_ref[...], preferred_element_type=jnp.float32)
    t = jnp.maximum(t + bc_ref[...], 0.0)                   # (H*W, Cmid) f32, ReLU

    # --- fused objectness + bbox heads, produced lane-dense (5A, H*W) via trans_b dot
    heads = lax.dot_general(
        wh_ref[...], t.astype(jnp.bfloat16),
        dimension_numbers=(((1,), (1,)), ((), ())),
        preferred_element_type=jnp.float32)                 # (5A, H*W)
    heads = heads + bh_ref[...]                             # per-channel bias (lane bcast)

    obj = heads[0:A]                                        # raw logits (A, H*W)
    dx = heads[A:2 * A]
    dy = heads[2 * A:3 * A]
    dw = jnp.minimum(heads[3 * A:4 * A], _BBOX_XFORM_CLIP)
    dh = jnp.minimum(heads[4 * A:5 * A], _BBOX_XFORM_CLIP)

    # --- BoxCoder.decode (weights = (1,1,1,1)), fused epilogue, all (A, H*W) f32
    anc = anc_ref[...]
    ax1, ay1 = anc[0:A], anc[A:2 * A]
    ax2, ay2 = anc[2 * A:3 * A], anc[3 * A:4 * A]
    widths = ax2 - ax1
    heights = ay2 - ay1
    ctr_x = ax1 + 0.5 * widths
    ctr_y = ay1 + 0.5 * heights
    pcx = dx * widths + ctr_x
    pcy = dy * heights + ctr_y
    pw = jnp.exp(dw) * widths
    ph = jnp.exp(dh) * heights

    out_ref[0] = jnp.concatenate(
        [obj,
         pcx - 0.5 * pw, pcy - 0.5 * ph,
         pcx + 0.5 * pw, pcy + 0.5 * ph], axis=0)           # (5A, H*W)


def prepare_head_params(head_params):
    """Fuse / reorder / cast torchvision-convention RPNHead weights for the kernel.

    Input convention (matches torchvision RPNHead):
      w_conv : (9, Cin, Cmid)  taps ordered ky*3+kx      b_conv : (1, Cmid)
      w_cls  : (Cmid, A)                                 b_cls  : (1, A)
      w_box  : (Cmid, 4*A) columns interleaved a*4+c     b_box  : (1, 4*A)
    The (a,4)-interleaved bbox columns are reordered to component-major (c*A+a)
    so the kernel can slice whole dx/dy/dw/dh row blocks.
    """
    w_conv = head_params["w_conv"]
    _, Cin, Cmid = w_conv.shape
    w_cls = head_params["w_cls"]
    A = w_cls.shape[1]
    w_box_cm = head_params["w_box"].reshape(Cmid, A, 4).transpose(0, 2, 1) \
                                   .reshape(Cmid, 4 * A)
    b_box_cm = head_params["b_box"].reshape(A, 4).T.reshape(4 * A)
    w_heads = jnp.concatenate([w_cls, w_box_cm], axis=1)           # (Cmid, 5A)
    b_heads = jnp.concatenate([head_params["b_cls"].reshape(A), b_box_cm])
    prep = {
        "w_conv": w_conv.reshape(9 * Cin, Cmid).astype(jnp.bfloat16),
        "b_conv": head_params["b_conv"].reshape(1, Cmid).astype(jnp.float32),
        "w_heads": jnp.transpose(w_heads).astype(jnp.bfloat16),    # (5A, Cmid)
        "b_heads": b_heads.reshape(5 * A, 1).astype(jnp.float32),
    }
    return prep, A


def rpn_head_decode_level(x_nhwc, prep, anchors_cl, A):
    """x_nhwc: (N, H, W, Cin) bf16. anchors_cl: (4A, H*W) f32.
    Returns objectness (N, H*W*A) and decoded proposals (N, H*W*A, 4)."""
    N, H, W, Cin = x_nhwc.shape
    Cmid = prep["b_conv"].shape[-1]
    HW = H * W
    # TODO(synk): for production-scale levels (Cin~256, H,W~100-200) add a row-stripe
    # grid axis with halo blocks (or manual DMA) sized per generation (v7x 64 MiB VMEM)
    # and fold the zero-padding into the kernel; the demo levels fit VMEM trivially.
    xp = jnp.pad(x_nhwc, ((0, 0), (1, 1), (1, 1), (0, 0)))

    kernel = functools.partial(_rpn_head_decode_kernel, H, W, Cin, Cmid, A)
    out = pl.pallas_call(
        kernel,
        out_shape=jax.ShapeDtypeStruct((N, 5 * A, HW), jnp.float32),
        grid=(N,),
        in_specs=[
            pl.BlockSpec((1, H + 2, W + 2, Cin), lambda n: (n, 0, 0, 0)),
            pl.BlockSpec((9 * Cin, Cmid), lambda n: (0, 0)),
            pl.BlockSpec((1, Cmid), lambda n: (0, 0)),
            pl.BlockSpec((5 * A, Cmid), lambda n: (0, 0)),
            pl.BlockSpec((5 * A, 1), lambda n: (0, 0)),
            # anchors are image-independent: same block reused across the grid
            pl.BlockSpec((4 * A, HW), lambda n: (0, 0)),
        ],
        out_specs=pl.BlockSpec((1, 5 * A, HW), lambda n: (n, 0, 0)),
        compiler_params=pltpu.CompilerParams(
            dimension_semantics=("parallel",),
            vmem_limit_bytes=32 * 1024 * 1024),
    )(xp, prep["w_conv"], prep["b_conv"], prep["w_heads"], prep["b_heads"],
      anchors_cl)

    # cheap layout plumbing on the small (K-sized) outputs only
    objectness = jnp.transpose(out[:, :A, :], (0, 2, 1)).reshape(N, HW * A)
    proposals = jnp.transpose(out[:, A:, :].reshape(N, 4, A, HW),
                              (0, 3, 2, 1)).reshape(N, HW * A, 4)
    return objectness, proposals


# --------------------------------------------------------------------------
# Anchor generation (plain JAX glue; matches torchvision AnchorGenerator)
# --------------------------------------------------------------------------
def cell_anchors(scales, aspect_ratios):
    scales = jnp.asarray(scales, jnp.float32)
    ar = jnp.asarray(aspect_ratios, jnp.float32)
    h_ratios = jnp.sqrt(ar)
    w_ratios = 1.0 / h_ratios
    ws = (w_ratios[:, None] * scales[None, :]).reshape(-1)
    hs = (h_ratios[:, None] * scales[None, :]).reshape(-1)
    base = jnp.stack([-ws, -hs, ws, hs], axis=1) / 2.0
    return jnp.round(base)                                   # (A, 4)


def grid_anchors_cl(feat_h, feat_w, stride_h, stride_w, cell):
    """Anchors in the kernel's component-major layout: (4A, H*W)."""
    A = cell.shape[0]
    shifts_x = jnp.arange(feat_w, dtype=jnp.float32) * stride_w
    shifts_y = jnp.arange(feat_h, dtype=jnp.float32) * stride_h
    sy, sx = jnp.meshgrid(shifts_y, shifts_x, indexing="ij")
    sx = sx.reshape(-1)
    sy = sy.reshape(-1)
    shifts = jnp.stack([sx, sy, sx, sy], axis=0)             # (4, H*W)
    anc = shifts[:, None, :] + jnp.transpose(cell)[:, :, None]   # (4, A, H*W)
    return anc.reshape(4 * A, feat_h * feat_w)


# --------------------------------------------------------------------------
# Proposal filtering (plain JAX glue; fixed-size padded outputs)
# --------------------------------------------------------------------------
def _pairwise_iou(boxes):
    area = (boxes[:, 2] - boxes[:, 0]) * (boxes[:, 3] - boxes[:, 1])
    lt = jnp.maximum(boxes[:, None, :2], boxes[None, :, :2])
    rb = jnp.minimum(boxes[:, None, 2:], boxes[None, :, 2:])
    wh = jnp.maximum(rb - lt, 0.0)
    inter = wh[..., 0] * wh[..., 1]
    union = area[:, None] + area[None, :] - inter
    return inter / jnp.maximum(union, 1e-9)


def _greedy_nms(iou, valid_sorted, iou_thresh):
    # IoU matrix precomputed once (vectorized); the serial loop only gathers rows.
    # TODO(synk): a lane-dense tiled Pallas NMS would remove this sequential loop.
    P = valid_sorted.shape[0]

    def body(i, carry):
        suppressed, kept = carry
        can_keep = valid_sorted[i] & jnp.logical_not(suppressed[i])
        kept = kept.at[i].set(can_keep)
        suppressed = suppressed | (can_keep & (iou[i] > iou_thresh))
        return suppressed, kept

    _, kept = lax.fori_loop(
        0, P, body, (jnp.zeros((P,), bool), jnp.zeros((P,), bool)))
    return kept


def filter_proposals(proposals, objectness, image_shapes, num_anchors_per_level,
                     pre_nms_top_n, post_nms_top_n, nms_thresh, min_size):
    # TODO(synk): torchvision returns variable-length per-image box lists; here we
    # return fixed-size padded arrays plus a valid-count per image.
    N = proposals.shape[0]
    offset = 0
    top_idx_parts = []
    for n_lvl in num_anchors_per_level:
        ob = objectness[:, offset:offset + n_lvl]
        k = min(pre_nms_top_n, n_lvl)
        _, idx = lax.top_k(ob, k)
        top_idx_parts.append(idx + offset)
        offset += n_lvl
    top_idx = jnp.concatenate(top_idx_parts, axis=1)          # (N, P)
    levels = jnp.concatenate(
        [jnp.full((n,), i, jnp.int32) for i, n in enumerate(num_anchors_per_level)])
    batch_idx = jnp.arange(N)[:, None]
    scores_all = objectness[batch_idx, top_idx]                # (N, P)
    lvls_all = levels[top_idx]                                 # (N, P)
    props_all = proposals[batch_idx, top_idx]                  # (N, P, 4)

    final_boxes, final_scores, final_counts = [], [], []
    for i in range(N):
        h, w = image_shapes[i]
        b = props_all[i]
        b = jnp.stack([jnp.clip(b[:, 0], 0.0, w), jnp.clip(b[:, 1], 0.0, h),
                       jnp.clip(b[:, 2], 0.0, w), jnp.clip(b[:, 3], 0.0, h)], axis=1)
        ws = b[:, 2] - b[:, 0]
        hs = b[:, 3] - b[:, 1]
        valid = (ws >= min_size) & (hs >= min_size)
        s = jnp.where(valid, scores_all[i], -jnp.inf)
        # batched_nms level-offset trick
        max_coord = jnp.max(b)
        offsets = lvls_all[i].astype(jnp.float32) * (max_coord + 1.0)
        b_nms = b + offsets[:, None]
        order = jnp.argsort(-s)
        b_s, bn_s, s_s, v_s = b[order], b_nms[order], s[order], valid[order]
        iou = _pairwise_iou(bn_s)                 # (P, P), computed once
        kept = _greedy_nms(iou, v_s, nms_thresh)
        P = kept.shape[0]
        rank = jnp.where(kept, jnp.arange(P), P)
        sel = jnp.argsort(rank)[:post_nms_top_n]
        sel_kept = kept[sel]
        final_boxes.append(jnp.where(sel_kept[:, None], b_s[sel], 0.0))
        final_scores.append(jnp.where(sel_kept, s_s[sel], -jnp.inf))
        final_counts.append(jnp.minimum(jnp.sum(kept.astype(jnp.int32)),
                                        post_nms_top_n))
    return final_boxes, final_scores, final_counts


# --------------------------------------------------------------------------
# Full RPN forward (inference path; targets=None -> losses = {})
# --------------------------------------------------------------------------
def rpn_forward(image_sizes, features_nchw, head_params, anchor_sizes,
                aspect_ratios, pre_nms_top_n, post_nms_top_n, nms_thresh,
                min_size=0.001):
    N = features_nchw[0].shape[0]
    img_h, img_w = image_sizes[0]
    prep, A = prepare_head_params(head_params)

    obj_parts, prop_parts, num_anchors_per_level = [], [], []
    for lvl, f in enumerate(features_nchw):
        # NCHW -> NHWC + bf16 cast (single XLA reformat); C lands on the lane axis.
        x = jnp.transpose(f, (0, 2, 3, 1)).astype(jnp.bfloat16)
        H, W = x.shape[1], x.shape[2]
        cell = cell_anchors(anchor_sizes[lvl], aspect_ratios[lvl])
        anchors_cl = grid_anchors_cl(H, W, img_h // H, img_w // W, cell)
        obj, prop = rpn_head_decode_level(x, prep, anchors_cl, A)
        obj_parts.append(obj)
        prop_parts.append(prop)
        num_anchors_per_level.append(H * W * A)

    objectness = jnp.concatenate(obj_parts, axis=1)            # (N, K) raw logits
    proposals = jnp.concatenate(prop_parts, axis=1)            # (N, K, 4) decoded

    boxes, scores, counts = filter_proposals(
        proposals, objectness, image_sizes, num_anchors_per_level,
        pre_nms_top_n, post_nms_top_n, nms_thresh, min_size)
    # TODO(synk): training path (anchor matching, fg/bg sampling, BCE + smooth-L1
    # losses) is not implemented; targets=None inference returns empty losses.
    losses = {}
    return boxes, scores, counts, losses


# --------------------------------------------------------------------------
if __name__ == "__main__":
    key = jax.random.PRNGKey(0)
    N, Cin = 2, 16
    A = 3                                        # 1 size x 3 aspect ratios per level
    anchor_sizes = ((32,), (64,))
    aspect_ratios = ((0.5, 1.0, 2.0), (0.5, 1.0, 2.0))
    image_sizes = [(64, 64), (64, 64)]

    k_f0, k_f1, k_wc, k_wcls, k_wbox = jax.random.split(key, 5)
    # features in PyTorch NCHW layout (two pyramid levels)
    feat0 = jax.random.normal(k_f0, (N, Cin, 16, 16), jnp.float32)
    feat1 = jax.random.normal(k_f1, (N, Cin, 8, 8), jnp.float32)

    head_params = {
        "w_conv": jax.random.normal(k_wc, (9, Cin, Cin), jnp.float32) * 0.05,
        "b_conv": jnp.zeros((1, Cin), jnp.float32),
        "w_cls": jax.random.normal(k_wcls, (Cin, A), jnp.float32) * 0.05,
        "b_cls": jnp.zeros((1, A), jnp.float32),
        "w_box": jax.random.normal(k_wbox, (Cin, 4 * A), jnp.float32) * 0.05,
        "b_box": jnp.zeros((1, 4 * A), jnp.float32),
    }

    boxes, scores, counts, losses = rpn_forward(
        image_sizes, [feat0, feat1], head_params, anchor_sizes, aspect_ratios,
        pre_nms_top_n=64, post_nms_top_n=16, nms_thresh=0.7)

    for b in boxes:
        jax.block_until_ready(b)
    for s in scores:
        jax.block_until_ready(s)
    assert boxes[0].shape == (16, 4) and scores[0].shape == (16,)
    assert losses == {}
    print("KERNEL_OK")
</pallas_src>

<mosaic_0001>
module attributes {stable_mosaic.version = 11 : i64} {
  func.func @_rpn_head_decode_kernel(%arg0: i32, %arg1: memref<1x18x18x16xbf16, #tpu.memory_space<vmem>>, %arg2: memref<144x16xbf16, #tpu.memory_space<vmem>>, %arg3: memref<1x16xf32, #tpu.memory_space<vmem>>, %arg4: memref<15x16xbf16, #tpu.memory_space<vmem>>, %arg5: memref<15x1xf32, #tpu.memory_space<vmem>>, %arg6: memref<12x256xf32, #tpu.memory_space<vmem>>, %arg7: memref<1x15x256xf32, #tpu.memory_space<vmem>>) attributes {dimension_semantics = [#tpu.dimension_semantics<parallel>], iteration_bounds = array<i64: 2>, scalar_prefetch = 0 : i64, scratch_operands = 0 : i64, tpu.core_type = #tpu.core_type<tc>, window_params = [{transform_indices = @transform_0, window_bounds = array<i64: 1, 18, 18, 16>}, {pipeline_mode = #tpu.pipeline_mode<synchronous>, transform_indices = @transform_1, window_bounds = array<i64: 144, 16>}, {pipeline_mode = #tpu.pipeline_mode<synchronous>, transform_indices = @transform_2, window_bounds = array<i64: 1, 16>}, {pipeline_mode = #tpu.pipeline_mode<synchronous>, transform_indices = @transform_3, window_bounds = array<i64: 15, 16>}, {pipeline_mode = #tpu.pipeline_mode<synchronous>, transform_indices = @transform_4, window_bounds = array<i64: 15, 1>}, {pipeline_mode = #tpu.pipeline_mode<synchronous>, transform_indices = @transform_5, window_bounds = array<i64: 12, 256>}, {transform_indices = @transform_6, window_bounds = array<i64: 1, 15, 256>}]} {
    %c0 = arith.constant 0 : index
    %c0_0 = arith.constant 0 : index
    %c0_1 = arith.constant 0 : index
    %c0_2 = arith.constant 0 : index
    %0 = vector.load %arg1[%c0, %c0_0, %c0_1, %c0_2] : memref<1x18x18x16xbf16, #tpu.memory_space<vmem>>, vector<1x18x18x16xbf16>
    %1 = vector.shape_cast %0 : vector<1x18x18x16xbf16> to vector<18x18x16xbf16>
    %2 = vector.extract_strided_slice %1 {offsets = [0, 0, 0], sizes = [16, 16, 16], strides = [1, 1, 1]} : vector<18x18x16xbf16> to vector<16x16x16xbf16>
    %3 = vector.shape_cast %2 : vector<16x16x16xbf16> to vector<256x16xbf16>
    %4 = vector.extract_strided_slice %1 {offsets = [0, 1, 0], sizes = [16, 16, 16], strides = [1, 1, 1]} : vector<18x18x16xbf16> to vector<16x16x16xbf16>
    %5 = vector.shape_cast %4 : vector<16x16x16xbf16> to vector<256x16xbf16>
    %6 = vector.extract_strided_slice %1 {offsets = [0, 2, 0], sizes = [16, 16, 16], strides = [1, 1, 1]} : vector<18x18x16xbf16> to vector<16x16x16xbf16>
    %7 = vector.shape_cast %6 : vector<16x16x16xbf16> to vector<256x16xbf16>
    %8 = vector.extract_strided_slice %1 {offsets = [1, 0, 0], sizes = [16, 16, 16], strides = [1, 1, 1]} : vector<18x18x16xbf16> to vector<16x16x16xbf16>
    %9 = vector.shape_cast %8 : vector<16x16x16xbf16> to vector<256x16xbf16>
    %10 = vector.extract_strided_slice %1 {offsets = [1, 1, 0], sizes = [16, 16, 16], strides = [1, 1, 1]} : vector<18x18x16xbf16> to vector<16x16x16xbf16>
    %11 = vector.shape_cast %10 : vector<16x16x16xbf16> to vector<256x16xbf16>
    %12 = vector.extract_strided_slice %1 {offsets = [1, 2, 0], sizes = [16, 16, 16], strides = [1, 1, 1]} : vector<18x18x16xbf16> to vector<16x16x16xbf16>
    %13 = vector.shape_cast %12 : vector<16x16x16xbf16> to vector<256x16xbf16>
    %14 = vector.extract_strided_slice %1 {offsets = [2, 0, 0], sizes = [16, 16, 16], strides = [1, 1, 1]} : vector<18x18x16xbf16> to vector<16x16x16xbf16>
    %15 = vector.shape_cast %14 : vector<16x16x16xbf16> to vector<256x16xbf16>
    %16 = vector.extract_strided_slice %1 {offsets = [2, 1, 0], sizes = [16, 16, 16], strides = [1, 1, 1]} : vector<18x18x16xbf16> to vector<16x16x16xbf16>
    %17 = vector.shape_cast %16 : vector<16x16x16xbf16> to vector<256x16xbf16>
    %18 = vector.extract_strided_slice %1 {offsets = [2, 2, 0], sizes = [16, 16, 16], strides = [1, 1, 1]} : vector<18x18x16xbf16> to vector<16x16x16xbf16>
    %19 = vector.shape_cast %18 : vector<16x16x16xbf16> to vector<256x16xbf16>
    %20 = tpu.concatenate %3, %5, %7, %9, %11, %13, %15, %17, %19 in 1 : vector<256x16xbf16>, vector<256x16xbf16>, vector<256x16xbf16>, vector<256x16xbf16>, vector<256x16xbf16>, vector<256x16xbf16>, vector<256x16xbf16>, vector<256x16xbf16>, vector<256x16xbf16> -> vector<256x144xbf16>
    %c0_3 = arith.constant 0 : index
    %c0_4 = arith.constant 0 : index
    %21 = vector.load %arg2[%c0_3, %c0_4] : memref<144x16xbf16, #tpu.memory_space<vmem>>, vector<144x16xbf16>
    %cst = arith.constant dense<0.000000e+00> : vector<256x16xf32>
    %22 = tpu.matmul %20, %21, %cst {dimension_numbers = #tpu.dot_dimension_numbers<[1], [0], [0], [1], [0, 0, 1, 1], [], []>} : vector<256x144xbf16>, vector<144x16xbf16>, vector<256x16xf32> -> vector<256x16xf32>
    %c0_5 = arith.constant 0 : index
    %c0_6 = arith.constant 0 : index
    %23 = vector.load %arg3[%c0_5, %c0_6] : memref<1x16xf32, #tpu.memory_space<vmem>>, vector<1x16xf32>
    %24 = vector.broadcast %23 : vector<1x16xf32> to vector<256x16xf32>
    %25 = arith.addf %22, %24 : vector<256x16xf32>
    %cst_7 = arith.constant 0.000000e+00 : f32
    %26 = vector.broadcast %cst_7 : f32 to vector<256x16xf32>
    %27 = arith.maximumf %25, %26 : vector<256x16xf32>
    %c0_8 = arith.constant 0 : index
    %c0_9 = arith.constant 0 : index
    %28 = vector.load %arg4[%c0_8, %c0_9] : memref<15x16xbf16, #tpu.memory_space<vmem>>, vector<15x16xbf16>
    %29 = arith.truncf %27 : vector<256x16xf32> to vector<256x16xbf16>
    %cst_10 = arith.constant dense<0.000000e+00> : vector<15x256xf32>
    %30 = tpu.matmul %28, %29, %cst_10 {dimension_numbers = #tpu.dot_dimension_numbers<[1], [1], [0], [0], [0, 0, 1, 0], [], []>} : vector<15x16xbf16>, vector<256x16xbf16>, vector<15x256xf32> -> vector<15x256xf32>
    %c0_11 = arith.constant 0 : index
    %c0_12 = arith.constant 0 : index
    %31 = vector.load %arg5[%c0_11, %c0_12] : memref<15x1xf32, #tpu.memory_space<vmem>>, vector<15x1xf32>
    %32 = vector.broadcast %31 : vector<15x1xf32> to vector<15x256xf32>
    %33 = arith.addf %30, %32 : vector<15x256xf32>
    %34 = vector.extract_strided_slice %33 {offsets = [0, 0], sizes = [3, 256], strides = [1, 1]} : vector<15x256xf32> to vector<3x256xf32>
    %35 = vector.extract_strided_slice %33 {offsets = [3, 0], sizes = [3, 256], strides = [1, 1]} : vector<15x256xf32> to vector<3x256xf32>
    %36 = vector.extract_strided_slice %33 {offsets = [6, 0], sizes = [3, 256], strides = [1, 1]} : vector<15x256xf32> to vector<3x256xf32>
    %37 = vector.extract_strided_slice %33 {offsets = [9, 0], sizes = [3, 256], strides = [1, 1]} : vector<15x256xf32> to vector<3x256xf32>
    %cst_13 = arith.constant 4.13516665 : f32
    %38 = vector.broadcast %cst_13 : f32 to vector<3x256xf32>
    %39 = arith.minimumf %37, %38 : vector<3x256xf32>
    %40 = vector.extract_strided_slice %33 {offsets = [12, 0], sizes = [3, 256], strides = [1, 1]} : vector<15x256xf32> to vector<3x256xf32>
    %cst_14 = arith.constant 4.13516665 : f32
    %41 = vector.broadcast %cst_14 : f32 to vector<3x256xf32>
    %42 = arith.minimumf %40, %41 : vector<3x256xf32>
    %c0_15 = arith.constant 0 : index
    %c0_16 = arith.constant 0 : index
    %43 = vector.load %arg6[%c0_15, %c0_16] : memref<12x256xf32, #tpu.memory_space<vmem>>, vector<12x256xf32>
    %44 = vector.extract_strided_slice %43 {offsets = [0, 0], sizes = [3, 256], strides = [1, 1]} : vector<12x256xf32> to vector<3x256xf32>
    %45 = vector.extract_strided_slice %43 {offsets = [3, 0], sizes = [3, 256], strides = [1, 1]} : vector<12x256xf32> to vector<3x256xf32>
    %46 = vector.extract_strided_slice %43 {offsets = [6, 0], sizes = [3, 256], strides = [1, 1]} : vector<12x256xf32> to vector<3x256xf32>
    %47 = vector.extract_strided_slice %43 {offsets = [9, 0], sizes = [3, 256], strides = [1, 1]} : vector<12x256xf32> to vector<3x256xf32>
    %48 = arith.subf %46, %44 : vector<3x256xf32>
    %49 = arith.subf %47, %45 : vector<3x256xf32>
    %cst_17 = arith.constant 5.000000e-01 : f32
    %50 = vector.broadcast %cst_17 : f32 to vector<3x256xf32>
    %51 = arith.mulf %50, %48 : vector<3x256xf32>
    %52 = arith.addf %44, %51 : vector<3x256xf32>
    %cst_18 = arith.constant 5.000000e-01 : f32
    %53 = vector.broadcast %cst_18 : f32 to vector<3x256xf32>
    %54 = arith.mulf %53, %49 : vector<3x256xf32>
    %55 = arith.addf %45, %54 : vector<3x256xf32>
    %56 = arith.mulf %35, %48 : vector<3x256xf32>
    %57 = arith.addf %56, %52 : vector<3x256xf32>
    %58 = arith.mulf %36, %49 : vector<3x256xf32>
    %59 = arith.addf %58, %55 : vector<3x256xf32>
    %60 = math.exp %39 : vector<3x256xf32>
    %61 = arith.mulf %60, %48 : vector<3x256xf32>
    %62 = math.exp %42 : vector<3x256xf32>
    %63 = arith.mulf %62, %49 : vector<3x256xf32>
    %cst_19 = arith.constant 5.000000e-01 : f32
    %64 = vector.broadcast %cst_19 : f32 to vector<3x256xf32>
    %65 = arith.mulf %64, %61 : vector<3x256xf32>
    %66 = arith.subf %57, %65 : vector<3x256xf32>
    %cst_20 = arith.constant 5.000000e-01 : f32
    %67 = vector.broadcast %cst_20 : f32 to vector<3x256xf32>
    %68 = arith.mulf %67, %63 : vector<3x256xf32>
    %69 = arith.subf %59, %68 : vector<3x256xf32>
    %cst_21 = arith.constant 5.000000e-01 : f32
    %70 = vector.broadcast %cst_21 : f32 to vector<3x256xf32>
    %71 = arith.mulf %70, %61 : vector<3x256xf32>
    %72 = arith.addf %57, %71 : vector<3x256xf32>
    %cst_22 = arith.constant 5.000000e-01 : f32
    %73 = vector.broadcast %cst_22 : f32 to vector<3x256xf32>
    %74 = arith.mulf %73, %63 : vector<3x256xf32>
    %75 = arith.addf %59, %74 : vector<3x256xf32>
    %76 = tpu.concatenate %34, %66, %69, %72, %75 in 0 : vector<3x256xf32>, vector<3x256xf32>, vector<3x256xf32>, vector<3x256xf32>, vector<3x256xf32> -> vector<15x256xf32>
    %c0_23 = arith.constant 0 : index
    %c0_24 = arith.constant 0 : index
    %c0_25 = arith.constant 0 : index
    %77 = vector.load %arg7[%c0_23, %c0_24, %c0_25] : memref<1x15x256xf32, #tpu.memory_space<vmem>>, vector<1x15x256xf32>
    %78 = vector.shape_cast %77 : vector<1x15x256xf32> to vector<15x256xf32>
    %79 = vector.shape_cast %76 : vector<15x256xf32> to vector<1x15x256xf32>
    tpu.vector_store %arg7[%c0_23, %c0_24, %c0_25], %79 {strides = array<i32>} : memref<1x15x256xf32, #tpu.memory_space<vmem>>, vector<1x15x256xf32>,
    return
  }
  func.func @transform_0(%arg0: i32) -> (i32, i32, i32, i32) {
    %c0_i32 = arith.constant 0 : i32
    %c0_i32_0 = arith.constant 0 : i32
    %c0_i32_1 = arith.constant 0 : i32
    %c0_i32_2 = arith.constant 0 : i32
    return %arg0, %c0_i32, %c0_i32_0, %c0_i32_1 : i32, i32, i32, i32
  }
  func.func @transform_1(%arg0: i32) -> (i32, i32) {
    %c0_i32 = arith.constant 0 : i32
    %c0_i32_0 = arith.constant 0 : i32
    %c0_i32_1 = arith.constant 0 : i32
    return %c0_i32, %c0_i32_0 : i32, i32
  }
  func.func @transform_2(%arg0: i32) -> (i32, i32) {
    %c0_i32 = arith.constant 0 : i32
    %c0_i32_0 = arith.constant 0 : i32
    %c0_i32_1 = arith.constant 0 : i32
    return %c0_i32, %c0_i32_0 : i32, i32
  }
  func.func @transform_3(%arg0: i32) -> (i32, i32) {
    %c0_i32 = arith.constant 0 : i32
    %c0_i32_0 = arith.constant 0 : i32
    %c0_i32_1 = arith.constant 0 : i32
    return %c0_i32, %c0_i32_0 : i32, i32
  }
  func.func @transform_4(%arg0: i32) -> (i32, i32) {
    %c0_i32 = arith.constant 0 : i32
    %c0_i32_0 = arith.constant 0 : i32
    %c0_i32_1 = arith.constant 0 : i32
    return %c0_i32, %c0_i32_0 : i32, i32
  }
  func.func @transform_5(%arg0: i32) -> (i32, i32) {
    %c0_i32 = arith.constant 0 : i32
    %c0_i32_0 = arith.constant 0 : i32
    %c0_i32_1 = arith.constant 0 : i32
    return %c0_i32, %c0_i32_0 : i32, i32
  }
  func.func @transform_6(%arg0: i32) -> (i32, i32, i32) {
    %c0_i32 = arith.constant 0 : i32
    %c0_i32_0 = arith.constant 0 : i32
    %c0_i32_1 = arith.constant 0 : i32
    return %arg0, %c0_i32, %c0_i32_0 : i32, i32, i32
  }
}

</mosaic_0001>

<bundles_post_ra>
// kernel: tpu_custom_call.1
= control target key start
LH: loop header
LB: loop body
LE: loop exit
PB: predicated region body
PF: predicated region fallthrough
CT: control target
= control target key end

     0   :  { %s2512_s21 = smov 0   ;;  %s3651_s0 = inlined_call_operand.vmem [shape: bf16[2,18,18,16], index: 0, kind: input, shape index: {}]   ;;  %s3652_s1 = inlined_call_operand.vmem [shape: bf16[144,16], index: 1, kind: input, shape index: {}]   ;;  %s3653_s2 = inlined_call_operand.vmem [shape: f32[1,16], index: 2, kind: input, shape index: {}]   ;;  %s3654_s3 = inlined_call_operand.vmem [shape: bf16[15,16], index: 3, kind: input, shape index: {}]   ;;  %s3655_s4 = inlined_call_operand.vmem [shape: f32[15,1], index: 4, kind: input, shape index: {}]   ;;  %s3656_s5 = inlined_call_operand.vmem [shape: f32[12,256], index: 5, kind: input, shape index: {}]   ;;  %s3657_s6 = inlined_call_operand.vmem [shape: f32[2,15,256], index: 6, kind: output, shape index: {}]  }
   0x1 LB: > { %s2235_s22 = sadd.s32 4294967295, %s2467_s21   ;;  %p2239_p0 = scmp.ge.s32.totalorder %s2467_s21, 1  ;;  %s2467_s21 = sphi %s2512_s21, %s16_s21  }
   0x2   : > { %p212_p1 = scmp.lt.s32.totalorder %s2467_s21, 3 }
   0x4   : > { %p213_p2 = pnand %p2239_p0, %p212_p1 }
   0x5   : > { %p242_p3 = scmp.lt.s32.totalorder (!%p213_p2), %s2235_s22, 1  ;;  %s2469_s29 = smov (!%p213_p2), 48  }
   0x6   : > { %216 = sbr.rel (%p213_p2) target bundleno = 796 (0x31c), region = 44  ;;  %s2470_s30 = smov (!%p213_p2), 96  }
   0x7   : > { %s2471_s7 = smov (!%p213_p2), 32   ;;  %s2472_s8 = smov (!%p213_p2), 64  }
   0x8   : > { %s2473_s9 = smov (!%p213_p2), 16   ;;  %s2474_s10 = smov (!%p213_p2), 112  }
   0x9   : > { %s2475_s11 = smov (!%p213_p2), 80  }
   0xb   : > { %v2420_v0 = vld [vmem:[%s3652_s1 + $0x40] sm:$0xff]  ;;  %s3663_s22 = smov (!%p242_p3, %s2235_s22), 1  ;;  %vm742_vm0 = vcmask 1042432   ;;  %vm743_vm1 = vcmask 1046532   ;;  %vm307_vm3 = vsmask.f32 3328 }
   0xc   : > { %1794 = vmatpush.bf16.msra.mxu1 %v2420_v0  ;;  %2430 = vmatpush.bf16.msra.mxu3 %v2420_v0  ;;  %s2431_s25 = smul.u32 216, %s3663_s22  ;;  %vm2532_vm2 = vmor %vm742_vm0, %vm743_vm1  ;;  %vm308_vm4 = vsmask.f32 7440  ;;  %vm1311_vm6 = vcmask 130048   ;;  %vm1360_vm7 = vcmask 261120   ;;  %vm1393_vm8 = vcmask 392192  }
   0xd   : > { %vm2572_vm5 = vmor %vm307_vm3, %vm308_vm4  ;;  %vm1426_vm9 = vcmask 523264   ;;  %vm1459_vm10 = vcmask 654336   ;;  %vm1492_vm11 = vcmask 785408   ;;  %vm1525_vm12 = vcmask 916480   ;;  %s2393_s24 = sshll.u32 %s3663_s22, 5 }
   0xe   : > { %s2529_s28 = scalar_lea.vmem %s3651_s0, %s2431_s25  ;;  %vm2046_vm13 = vcmask 1041408   ;;  %vm2065_vm14 = vcmask 1044480   ;;  %vm2157_vm15 = vcmask 1045504   ;;  %s3631_s27 = scalar_lea.vmem %s3657_s6, %s2393_s24  ;;  %vm2170_vm1 = vcmask 1040384  }
   0xf   : > { %v2395_v2 = vld [vmem:[%s2529_s28 + $0xc] sm:$0xff]  ;;  %v253_v3 = vld [vmem:[%s2529_s28] sm:$0xf]  ;;  %v254_v4 = vld [vmem:[%s2529_s28 + $0x4] sm:$0xf] }
  0x10   : > { %v255_v5 = vld [vmem:[%s2529_s28 + $0x8] sm:$0x1]  ;;  %v324_v6 = vshrl.u32 %v254_v4, 16  ;;  %v2243_v7 = vrot.slane %v253_v3, 9  ;;  %v747_v8 = vrot.slane %v254_v4, 5  ;;  %v311_v9 = vshrl.u32 %v253_v3, 16  ;;  %1136 = vrot.lane.b32.xlu1 %v2395_v2, %s2469_s29 }
  0x11   : > { %v330_v10 = vshll.u32 %v255_v5, 16  ;;  %v750_v11 = vrot.slane %v255_v5, 5  ;;  %v314_v12 = vshll.u32 %v253_v3, 16  ;;  %v2542_v13 = vld [vmem:[%s2529_s28 + $0xc] sm:$0xf]  ;;  %v320_v14 = vshll.u32 %v254_v4, 16 }
  0x12   : > { %v748_v15 = vsel %vm2532_vm2, %v2243_v7, %v747_v8  ;;  %v749_v16 = vrot.slane %v747_v8, 4  ;;  %v2547_v17 = vld [vmem:[%s2529_s28 + $0x10] sm:$0xf]  ;;  %v2550_v18 = vld [vmem:[%s2529_s28 + $0x14] sm:$0x1]  ;;  %v335_v19 = vshrl.u32 %v2542_v13, 16 }
  0x13   : > { %v1053_v20 = vunpack.c.l.b16 %v748_v15  ;;  %v338_v21 = vshll.u32 %v2542_v13, 16  ;;  %v344_v22 = vshll.u32 %v2547_v17, 16  ;;  %v348_v23 = vshrl.u32 %v2547_v17, 16  ;;  %v2560_v28 = vld [vmem:[%s2529_s28 + $0x18] sm:$0xff]  ;;  %v2563_v33 = vld [vmem:[%s2529_s28 + $0x6c] sm:$0xf] }
  0x14   : > { %v751_v24 = vsel %vm2532_vm2, %v749_v16, %v750_v11  ;;  %v337_v25 = vrot.slane %v335_v19, 4  ;;  %v354_v26 = vshll.u32 %v2550_v18, 16  ;;  %v313_v27 = vrot.slane %v311_v9, 4  ;;  %v2566_v38 = vld [vmem:[%s2529_s28 + $0x70] sm:$0xf]  ;;  %1241 = vrot.lane.b32.xlu2 %v2560_v28, %s2470_s30 }
  0x15   : > { %v1054_v29 = vunpack.c.l.b16 %v751_v24  ;;  %v340_v30 = vrot.slane %v338_v21, 5  ;;  %v346_v31 = vrot.slane %v344_v22, 5  ;;  %v350_v32 = vrot.slane %v348_v23, 4  ;;  %v2586_v58 = vld [vmem:[%s2529_s28 + $0x74] sm:$0x1] }
  0x16   : > { %v356_v34 = vrot.slane %v354_v26, 5  ;;  %v316_v35 = vrot.slane %v314_v12, 5  ;;  %v322_v36 = vrot.slane %v320_v14, 5  ;;  %v326_v37 = vrot.slane %v324_v6, 4  ;;  %v260_v61 = vld [vmem:[%s2529_s28 + $0x1c] sm:$0xf] }
  0x17   : > { %v1085_v39 = vpack.c.b16 %v1054_v29, %v1053_v20  ;;  %v341_v40 = vor.u32 %v340_v30, %v337_v25  ;;  %v351_v41 = vor.u32 %v350_v32, %v346_v31  ;;  %v332_v42 = vrot.slane %v330_v10, 5  ;;  %v261_v3 = vld [vmem:[%s2529_s28 + $0x20] sm:$0x1]  ;;  %v259_v8 = vld [vmem:[%s2529_s28 + $0x18] sm:$0xf] }
  0x18   : > { %v317_v44 = vor.u32 %v316_v35, %v313_v27  ;;  %v327_v45 = vor.u32 %v326_v37, %v322_v36  ;;  %v527_v46 = vshrl.u32 %v2563_v33, 16  ;;  %v530_v47 = vshll.u32 %v2563_v33, 16  ;;  %v2606_v29 = vld [vmem:[%s2529_s28 + $0x78] sm:$0xf]  ;;  %v2613_v35 = vld [vmem:[%s2529_s28 + $0x7c] sm:$0xf] }
  0x19   : > { %1101 = vrot.lane.b32.xlu0 %v1085_v39, %s2471_s7  ;;  %v342_v48 = vrot.slane %v341_v40, 4  ;;  %v352_v49 = vrot.slane %v351_v41, 4  ;;  %v536_v50 = vshll.u32 %v2566_v38, 16  ;;  %v540_v51 = vshrl.u32 %v2566_v38, 16 }
  0x1a   : > { %v318_v52 = vrot.slane %v317_v44, 4  ;;  %v328_v53 = vrot.slane %v327_v45, 4  ;;  %v529_v54 = vrot.slane %v527_v46, 4  ;;  %v532_v55 = vrot.slane %v530_v47, 5  ;;  %v2616_v44 = vld [vmem:[%s2529_s28 + $0x80] sm:$0x1] }
  0x1b   : > { %v347_v56 = vsel %vm2572_vm5, %v342_v48, %v346_v31  ;;  %v357_v57 = vsel %vm2572_vm5, %v352_v49, %v356_v34  ;;  %v538_v59 = vrot.slane %v536_v50, 5  ;;  %v542_v60 = vrot.slane %v540_v51, 4  ;;  %v2626_v51 = vld [vmem:[%s2529_s28 + $0x24] sm:$0xf] }
  0x1c   : > { %v975_v62 = vunpack.c.l.b16 %v347_v56  ;;  %v976_v63 = vunpack.c.l.b16 %v357_v57  ;;  %v323_v0 = vsel %vm2572_vm5, %v318_v52, %v322_v36  ;;  %v333_v2 = vsel %vm2572_vm5, %v328_v53, %v332_v42  ;;  %v2629_v52 = vld [vmem:[%s2529_s28 + $0x28] sm:$0xf]  ;;  %v2632_v57 = vld [vmem:[%s2529_s28 + $0x2c] sm:$0x1] }
  0x1d   : > { %v973_v4 = vunpack.c.l.b16 %v323_v0  ;;  %v974_v5 = vunpack.c.l.b16 %v333_v2  ;;  %v533_v6 = vor.u32 %v532_v55, %v529_v54  ;;  %v543_v7 = vor.u32 %v542_v60, %v538_v59 }
  0x1e   : > { %v2595_v9 = vpack.c.b16 %v976_v63, %v975_v62  ;;  %v546_v10 = vshll.u32 %v2586_v58, 16  ;;  %v2245_v11 = vrot.slane %v259_v8, 9  ;;  %v761_v12 = vrot.slane %v260_v61, 5 }
  0x1f   : > { %v1005_v14 = vpack.c.b16 %v974_v5, %v973_v4  ;;  %v534_v15 = vrot.slane %v533_v6, 4  ;;  %v544_v16 = vrot.slane %v543_v7, 4  ;;  %v764_v19 = vrot.slane %v261_v3, 5 }
  0x20   : > { %1171 = vrot.lane.b32.xlu1 %v2595_v9, %s2472_s8  ;;  %v548_v20 = vrot.slane %v546_v10, 5  ;;  %v762_v21 = vsel %vm2532_vm2, %v2245_v11, %v761_v12  ;;  %v763_v22 = vrot.slane %v761_v12, 4  ;;  %v359_v23 = vshrl.u32 %v259_v8, 16 }
  0x21   : > { %1021 = vrot.lane.b32.xlu0 %v1005_v14, %s2473_s9  ;;  %v539_v24 = vsel %vm2572_vm5, %v534_v15, %v538_v59  ;;  %v1057_v25 = vunpack.c.l.b16 %v762_v21  ;;  %v362_v26 = vshll.u32 %v259_v8, 16  ;;  %v368_v27 = vshll.u32 %v260_v61, 16 }
  0x22   : > { %v549_v30 = vsel %vm2572_vm5, %v544_v16, %v548_v20  ;;  %v991_v31 = vunpack.c.l.b16 %v539_v24  ;;  %v765_v32 = vsel %vm2532_vm2, %v763_v22, %v764_v19  ;;  %v361_v34 = vrot.slane %v359_v23, 4 }
  0x23   : > { %v992_v36 = vunpack.c.l.b16 %v549_v30  ;;  %v1058_v37 = vunpack.c.l.b16 %v765_v32  ;;  %v364_v39 = vrot.slane %v362_v26, 5  ;;  %v370_v40 = vrot.slane %v368_v27, 5 }
  0x24   : > { %v372_v41 = vshrl.u32 %v260_v61, 16  ;;  %v378_v42 = vshll.u32 %v261_v3, 16  ;;  %v551_v45 = vshrl.u32 %v2606_v29, 16  ;;  %v554_v46 = vshll.u32 %v2606_v29, 16 }
  0x25   : > { %v2620_v47 = vpack.c.b16 %v992_v36, %v991_v31  ;;  %v2622_v48 = vpack.c.b16 %v1058_v37, %v1057_v25  ;;  %v365_v49 = vor.u32 %v364_v39, %v361_v34  ;;  %v560_v50 = vshll.u32 %v2613_v35, 16 }
  0x26   : > { %v374_v53 = vrot.slane %v372_v41, 4  ;;  %v380_v54 = vrot.slane %v378_v42, 5  ;;  %v553_v55 = vrot.slane %v551_v45, 4  ;;  %v556_v56 = vrot.slane %v554_v46, 5  ;;  %v2670_v42 = vld [vmem:[%s2529_s28 + $0x34] sm:$0xf] }
  0x27   : > { %2369 = vmatmul.msk.bf16.vlgmr.msra.gmra.mxu1 %vm1311_vm6, %v2622_v48  ;;  %v366_v59 = vrot.slane %v365_v49, 4  ;;  %v562_v60 = vrot.slane %v560_v50, 5  ;;  %v564_v61 = vshrl.u32 %v2613_v35, 16  ;;  %v570_v62 = vshll.u32 %v2616_v44, 16  ;;  %v2677_v46 = vld [vmem:[%s2529_s28 + $0x84] sm:$0xf] }
  0x28   : > { %1039 = vrot.lane.b32.xlu1 %v2620_v47, %s2473_s9  ;;  %v375_v63 = vor.u32 %v374_v53, %v370_v40  ;;  %v557_v0 = vor.u32 %v556_v56, %v553_v55  ;;  %v2246_v2 = vrot.slane %v2626_v51, 9  ;;  %v768_v3 = vrot.slane %v2629_v52, 5  ;;  %v2693_v56 = vld [vmem:[%s2529_s28 + $0x88] sm:$0xf] }
  0x29   : > { %v371_v4 = vsel %vm2572_vm5, %v366_v59, %v370_v40  ;;  %v566_v5 = vrot.slane %v564_v61, 4  ;;  %v572_v6 = vrot.slane %v570_v62, 5  ;;  %v771_v7 = vrot.slane %v2632_v57, 5  ;;  %v2696_v59 = vld [vmem:[%s2529_s28 + $0x78] sm:$0xff] }
  0x2a   : > { %v376_v8 = vrot.slane %v375_v63, 4  ;;  %v977_v10 = vunpack.c.l.b16 %v371_v4  ;;  %v558_v11 = vrot.slane %v557_v0, 4  ;;  %v769_v12 = vsel %vm2532_vm2, %v2246_v2, %v768_v3  ;;  %v2701_v62 = vld [vmem:[%s2529_s28 + $0x38] sm:$0x1] }
  0x2b   : > { %v567_v14 = vor.u32 %v566_v5, %v562_v60  ;;  %v770_v15 = vrot.slane %v768_v3, 4  ;;  %v1059_v16 = vunpack.c.l.b16 %v769_v12  ;;  %v2244_v19 = vrot.slane %v2542_v13, 9  ;;  %v2711_v5 = vld [vmem:[%s2529_s28 + $0x8c] sm:$0x1] }
  0x2c   : > { %v381_v20 = vsel %vm2572_vm5, %v376_v8, %v380_v54  ;;  %v563_v21 = vsel %vm2572_vm5, %v558_v11, %v562_v60  ;;  %v754_v22 = vrot.slane %v2547_v17, 5  ;;  %v757_v23 = vrot.slane %v2550_v18, 5  ;;  %v2689_v54 = vld [vmem:[%s2529_s28 + $0x30] sm:$0xf] }
  0x2d   : > { %v978_v24 = vunpack.c.l.b16 %v381_v20  ;;  %v568_v25 = vrot.slane %v567_v14, 4  ;;  %v993_v26 = vunpack.c.l.b16 %v563_v21  ;;  %v772_v27 = vsel %vm2532_vm2, %v770_v15, %v771_v7 }
  0x2e   : > { %v1060_v30 = vunpack.c.l.b16 %v772_v27  ;;  %v755_v13 = vsel %vm2532_vm2, %v2244_v19, %v754_v22  ;;  %v756_v31 = vrot.slane %v754_v22, 4  ;;  %v2252_v32 = vrot.slane %v2563_v33, 9 }
  0x2f   : > { %v2659_v34 = vpack.c.b16 %v978_v24, %v977_v10  ;;  %v573_v17 = vsel %vm2572_vm5, %v568_v25, %v572_v6  ;;  %v1055_v18 = vunpack.c.l.b16 %v755_v13  ;;  %v810_v36 = vrot.slane %v2566_v38, 5  ;;  %v2732_v24 = vld [vmem:[%s2529_s28 + $0x84] sm:$0xff] }
  0x30   : > { %v994_v37 = vunpack.c.l.b16 %v573_v17  ;;  %v758_v39 = vsel %vm2532_vm2, %v756_v31, %v757_v23  ;;  %v813_v40 = vrot.slane %v2586_v58, 5  ;;  %v2679_v49 = vpack.c.b16 %v1060_v30, %v1059_v16  ;;  %v2741_v17 = vld [vmem:[%s2529_s28 + $0x40] sm:$0xf] }
  0x31   : > { %1276 = vrot.lane.b32.xlu0 %v2659_v34, %s2474_s10  ;;  %v1056_v33 = vunpack.c.l.b16 %v758_v39  ;;  %v812_v41 = vrot.slane %v810_v36, 4  ;;  %v811_v38 = vsel %vm2532_vm2, %v2252_v32, %v810_v36  ;;  %v817_v53 = vrot.slane %v2613_v35, 5 }
  0x32   : > { %v2672_v45 = vpack.c.b16 %v994_v37, %v993_v26  ;;  %v775_v55 = vrot.slane %v2670_v42, 5  ;;  %v1071_v60 = vunpack.c.l.b16 %v811_v38  ;;  %v2253_v35 = vrot.slane %v2606_v29, 9  ;;  %v2758_v38 = vld [vmem:[%s2529_s28 + $0x90] sm:$0xf] }
  0x33   : > { %v2681_v58 = vpack.c.b16 %v1056_v33, %v1055_v18  ;;  %v814_v50 = vsel %vm2532_vm2, %v812_v41, %v813_v40  ;;  %v575_v63 = vshrl.u32 %v2677_v46, 16  ;;  %v819_v0 = vrot.slane %v817_v53, 4  ;;  %v2754_v33 = vld [vmem:[%s2529_s28 + $0x3c] sm:$0xf] }
  0x34   : > { %1189 = vrot.lane.b32.xlu1 %v2672_v45, %s2472_s8  ;;  %v1072_v61 = vunpack.c.l.b16 %v814_v50  ;;  %v820_v2 = vrot.slane %v2616_v44, 5  ;;  %v578_v3 = vshll.u32 %v2677_v46, 16  ;;  %v2247_v4 = vrot.slane %v2689_v54, 9 }
  0x35   : > { %1206 = vrot.lane.b32.xlu2 %v2681_v58, %s2475_s11  ;;  %v577_v6 = vrot.slane %v575_v63, 4  ;;  %v584_v7 = vshll.u32 %v2693_v56, 16  ;;  %v777_v8 = vrot.slane %v775_v55, 4  ;;  %v778_v29 = vrot.slane %v2701_v62, 5 }
  0x36   : > { %v580_v10 = vrot.slane %v578_v3, 5  ;;  %v588_v11 = vshrl.u32 %v2693_v56, 16  ;;  %v2718_v44 = vpack.c.b16 %v1072_v61, %v1071_v60  ;;  %v818_v12 = vsel %vm2532_vm2, %v2253_v35, %v817_v53  ;;  %v2764_v60 = vld [vmem:[%s2529_s28 + $0x44] sm:$0x1] }
  0x37   : > { %2370 = vmatmul.msk.bf16.gmra.mxu1 %vm1311_vm6, %v2679_v49  ;;  %v586_v14 = vrot.slane %v584_v7, 5  ;;  %v821_v15 = vsel %vm2532_vm2, %v819_v0, %v820_v2  ;;  %v594_v20 = vshll.u32 %v2711_v5, 16  ;;  %v776_v21 = vsel %vm2532_vm2, %v2247_v4, %v775_v55  ;;  %v2777_v7 = vld [vmem:[%s2529_s28 + $0x24] sm:$0xff] }
  0x38   : > { %v581_v16 = vor.u32 %v580_v10, %v577_v6  ;;  %v590_v19 = vrot.slane %v588_v11, 4  ;;  %v779_v22 = vsel %vm2532_vm2, %v777_v8, %v778_v29  ;;  %v1073_v25 = vunpack.c.l.b16 %v818_v12 }
  0x39   : > { %1154 = vrot.lane.b32.xlu0 %v2696_v59, %s2469_s29  ;;  %v1074_v26 = vunpack.c.l.b16 %v821_v15  ;;  %v596_v13 = vrot.slane %v594_v20, 5  ;;  %v1062_v31 = vunpack.c.l.b16 %v779_v22  ;;  %v383_v37 = vshrl.u32 %v2626_v51, 16 }
  0x3a   : > { %v591_v23 = vor.u32 %v590_v19, %v586_v14  ;;  %v582_v27 = vrot.slane %v581_v16, 4  ;;  %v386_v40 = vshll.u32 %v2626_v51, 16  ;;  %v782_v41 = vrot.slane %v2741_v17, 5  ;;  %v2767_v51 = vld [vmem:[%s2529_s28 + $0x94] sm:$0xf] }
  0x3b   : > { %v2738_v32 = vpack.c.b16 %v1074_v26, %v1073_v25  ;;  %v392_v50 = vshll.u32 %v2629_v52, 16  ;;  %v824_v61 = vrot.slane %v2693_v56, 5  ;;  %v385_v35 = vrot.slane %v383_v37, 4  ;;  %v2806_v37 = vld [vmem:[%s2529_s28 + $0x4c] sm:$0xf] }
  0x3c   : > { %1023 = vrot.lane.b32.xlu1 %v2595_v9, %s2473_s9  ;;  %v592_v30 = vrot.slane %v591_v23, 4  ;;  %v1061_v9 = vunpack.c.l.b16 %v776_v21  ;;  %v587_v18 = vsel %vm2572_vm5, %v582_v27, %v586_v14  ;;  %v388_v63 = vrot.slane %v386_v40, 5 }
  0x3d   : > { %1119 = vrot.lane.b32.xlu2 %v2718_v44, %s2471_s7  ;;  %v995_v53 = vunpack.c.l.b16 %v587_v18  ;;  %v394_v0 = vrot.slane %v392_v50, 5  ;;  %v2248_v2 = vrot.slane %v2754_v33, 9  ;;  %v599_v3 = vshrl.u32 %v2758_v38, 16 }
  0x3e   : > { %v597_v36 = vsel %vm2572_vm5, %v592_v30, %v596_v13  ;;  %v2748_v39 = vpack.c.b16 %v1062_v31, %v1061_v9  ;;  %v602_v4 = vshll.u32 %v2758_v38, 16  ;;  %v784_v8 = vrot.slane %v782_v41, 4 }
  0x3f   : > { %v996_v55 = vunpack.c.l.b16 %v597_v36  ;;  %v608_v56 = vshll.u32 %v2767_v51, 16  ;;  %v612_v29 = vshrl.u32 %v2767_v51, 16  ;;  %v2254_v11 = vrot.slane %v2677_v46, 9 }
  0x40   : > { %v389_v12 = vor.u32 %v388_v63, %v385_v35  ;;  %v402_v15 = vshll.u32 %v2632_v57, 16  ;;  %v826_v16 = vrot.slane %v824_v61, 4  ;;  %v827_v19 = vrot.slane %v2711_v5, 5  ;;  %v2798_v57 = vld [vmem:[%s2529_s28 + $0x98] sm:$0x1] }
  0x41   : > { %1259 = vrot.lane.b32.xlu0 %v2732_v24, %s2470_s30  ;;  %v2784_v10 = vpack.c.b16 %v996_v55, %v995_v53  ;;  %v601_v20 = vrot.slane %v599_v3, 4  ;;  %v604_v21 = vrot.slane %v602_v4, 5  ;;  %v610_v46 = vrot.slane %v608_v56, 5  ;;  %v2825_v4 = vld [vmem:[%s2529_s28 + $0x50] sm:$0x1] }
  0x42   : > { %v614_v23 = vrot.slane %v612_v29, 4  ;;  %v390_v5 = vrot.slane %v389_v12, 4  ;;  %v404_v26 = vrot.slane %v402_v15, 5  ;;  %v825_v27 = vsel %vm2532_vm2, %v2254_v11, %v824_v61 }
  0x43   : > { %v605_v9 = vor.u32 %v604_v21, %v601_v20  ;;  %v828_v31 = vsel %vm2532_vm2, %v826_v16, %v827_v19  ;;  %v618_v36 = vshll.u32 %v2798_v57, 16  ;;  %v1075_v40 = vunpack.c.l.b16 %v825_v27 }
  0x44   : > { %1138 = vrot.lane.b32.xlu1 %v2560_v28, %s2469_s29  ;;  %v396_v28 = vshrl.u32 %v2629_v52, 16  ;;  %v785_v52 = vrot.slane %v2764_v60, 5  ;;  %v615_v18 = vor.u32 %v614_v23, %v610_v46  ;;  %v1076_v53 = vunpack.c.l.b16 %v828_v31  ;;  %v2860_v31 = vld [vmem:[%s2529_s28 + $0x58] sm:$0xf] }
  0x45   : > { %1224 = vrot.lane.b32.xlu2 %v2738_v32, %s2475_s11  ;;  %v789_v61 = vrot.slane %v2806_v37, 5  ;;  %v620_v63 = vrot.slane %v618_v36, 5  ;;  %v792_v11 = vrot.slane %v2825_v4, 5  ;;  %v407_v12 = vshrl.u32 %v2689_v54, 16 }
  0x46   : > { %v398_v6 = vrot.slane %v396_v28, 4  ;;  %v786_v22 = vsel %vm2532_vm2, %v784_v8, %v785_v52  ;;  %v606_v28 = vrot.slane %v605_v9, 4  ;;  %v616_v35 = vrot.slane %v615_v18, 4 }
  0x47   : > { %2371 = vmatmul.msk.bf16.gmra.mxu1 %vm1311_vm6, %v2748_v39  ;;  %v1064_v13 = vunpack.c.l.b16 %v786_v22  ;;  %v791_v56 = vrot.slane %v789_v61, 4  ;;  %v416_v16 = vshll.u32 %v2670_v42, 16  ;;  %v420_v19 = vshrl.u32 %v2670_v42, 16 }
  0x48   : > { %v399_v14 = vor.u32 %v398_v6, %v394_v0  ;;  %v2827_v6 = vpack.c.b16 %v1076_v53, %v1075_v40  ;;  %v611_v8 = vsel %vm2572_vm5, %v606_v28, %v610_v46  ;;  %v621_v29 = vsel %vm2572_vm5, %v616_v35, %v620_v63  ;;  %v2882_v35 = vld [vmem:[%s2529_s28 + $0x5c] sm:$0x1] }
  0x49   : > { %1103 = vrot.lane.b32.xlu0 %v2681_v58, %s2471_s7  ;;  %v783_v58 = vsel %vm2532_vm2, %v2248_v2, %v782_v41  ;;  %v395_v41 = vsel %vm2572_vm5, %v390_v5, %v394_v0  ;;  %v2820_v2 = vld [vmem:[%s2529_s28 + $0x48] sm:$0xf]  ;;  %v997_v20 = vunpack.c.l.b16 %v611_v8  ;;  %v998_v21 = vunpack.c.l.b16 %v621_v29 }
  0x4a   : > { %v400_v25 = vrot.slane %v399_v14, 4  ;;  %v1063_v30 = vunpack.c.l.b16 %v783_v58  ;;  %v979_v0 = vunpack.c.l.b16 %v395_v41  ;;  %v2249_v52 = vrot.slane %v2820_v2, 9 }
  0x4b   : > { %v410_v14 = vshll.u32 %v2689_v54, 16  ;;  %v793_v54 = vsel %vm2532_vm2, %v791_v56, %v792_v11  ;;  %v409_v22 = vrot.slane %v407_v12, 4  ;;  %v418_v23 = vrot.slane %v416_v16, 5  ;;  %v2418_v56 = vld [vmem:[%s3652_s1 + $0x30] sm:$0xff] }
  0x4c   : > { %1243 = vrot.lane.b32.xlu1 %v2777_v7, %s2470_s30  ;;  %v405_v50 = vsel %vm2572_vm5, %v400_v25, %v404_v26  ;;  %v2814_v55 = vpack.c.b16 %v1064_v13, %v1063_v30  ;;  %v790_v58 = vsel %vm2532_vm2, %v2249_v52, %v789_v61  ;;  %v422_v5 = vrot.slane %v420_v19, 4  ;;  %v2879_v61 = vld [vmem:[%s2529_s28 + $0x54] sm:$0xf] }
  0x4d   : > { %1294 = vrot.lane.b32.xlu2 %v2784_v10, %s2474_s10  ;;  %v980_v3 = vunpack.c.l.b16 %v405_v50  ;;  %v412_v46 = vrot.slane %v410_v14, 5  ;;  %v1065_v42 = vunpack.c.l.b16 %v790_v58  ;;  %v1066_v25 = vunpack.c.l.b16 %v793_v54  ;;  %v2900_v12 = vld [vmem:[%s2529_s28 + $0x90] sm:$0xff] }
  0x4e   : > { %v2853_v26 = vpack.c.b16 %v998_v21, %v997_v20  ;;  %v831_v30 = vrot.slane %v2767_v51, 5  ;;  %v423_v13 = vor.u32 %v422_v5, %v418_v23  ;;  %v426_v9 = vshll.u32 %v2701_v62, 16  ;;  %v2419_v62 = vld [vmem:[%s3652_s1 + $0x38] sm:$0xff]  ;;  %v2417_v20 = vld [vmem:[%s3652_s1 + $0x28] sm:$0xff]  ;;  %v2929_v5 = vld [vmem:[%s2529_s28 + $0xa0] sm:$0xf] }
  0x4f   : > { %v2841_v15 = vpack.c.b16 %v980_v3, %v979_v0  ;;  %v413_v27 = vor.u32 %v412_v46, %v409_v22  ;;  %v2255_v18 = vrot.slane %v2758_v38, 9  ;;  %v834_v40 = vrot.slane %v2798_v57, 5  ;;  %1698 = vmatpush.bf16.msra.mxu0 %v2419_v62  ;;  %2422 = vmatpush.bf16.msra.mxu2 %v2419_v62  ;;  %v2918_v22 = vld [vmem:[%s2529_s28 + $0x64] sm:$0xf] }
  0x50   : > { %v833_v36 = vrot.slane %v831_v30, 4  ;;  %v2864_v41 = vpack.c.b16 %v1066_v25, %v1065_v42  ;;  %v796_v50 = vrot.slane %v2860_v31, 5  ;;  %v424_v57 = vrot.slane %v423_v13, 4  ;;  %v2416_v46 = vld [vmem:[%s3652_s1 + $0x20] sm:$0xff] }
  0x51   : > { %1208 = vrot.lane.b32.xlu0 %v2622_v48, %s2475_s11  ;;  %v414_v51 = vrot.slane %v413_v27, 4  ;;  %v832_v53 = vsel %vm2532_vm2, %v2255_v18, %v831_v30  ;;  %v428_v28 = vrot.slane %v426_v9, 5  ;;  %v2250_v8 = vrot.slane %v2879_v61, 9  ;;  %v2934_v25 = vld [vmem:[%s2529_s28 + $0x60] sm:$0xf]  ;;  %v2940_v30 = vld [vmem:[%s2529_s28 + $0x30] sm:$0xff] }
  0x52   : > { %v835_v38 = vsel %vm2532_vm2, %v833_v36, %v834_v40  ;;  %v1077_v63 = vunpack.c.l.b16 %v832_v53  ;;  %v798_v52 = vrot.slane %v796_v50, 4  ;;  %v803_v27 = vrot.slane %v2918_v22, 5  ;;  %v2952_v40 = vld [vmem:[%s2529_s28 + $0x68] sm:$0x1] }
  0x53   : > { %v1078_v0 = vunpack.c.l.b16 %v835_v38  ;;  %v419_v29 = vsel %vm2572_vm5, %v414_v51, %v418_v23  ;;  %v429_v11 = vsel %vm2572_vm5, %v424_v57, %v428_v28  ;;  %1699 = vmatpush.bf16.msra.mxu0 %v2418_v56  ;;  %2423 = vmatpush.bf16.msra.mxu2 %v2418_v56  ;;  %v797_v16 = vsel %vm2532_vm2, %v2250_v8, %v796_v50  ;;  %v2926_v23 = vld [vmem:[%s2529_s28 + $0x9c] sm:$0xf] }
  0x54   : > { %1121 = vrot.lane.b32.xlu1 %v2738_v32, %s2471_s7  ;;  %v982_v14 = vunpack.c.l.b16 %v429_v11  ;;  %v1067_v21 = vunpack.c.l.b16 %v797_v16  ;;  %v431_v13 = vshrl.u32 %v2754_v33, 16  ;;  %v434_v9 = vshll.u32 %v2754_v33, 16 }
  0x55   : > { %1173 = vrot.lane.b32.xlu2 %v2659_v34, %s2472_s8  ;;  %v2886_v3 = vpack.c.b16 %v1078_v0, %v1077_v63  ;;  %v440_v18 = vshll.u32 %v2741_v17, 16  ;;  %v444_v36 = vshrl.u32 %v2741_v17, 16  ;;  %v623_v51 = vshrl.u32 %v2926_v23, 16  ;;  %v2414_v0 = vld [vmem:[%s3652_s1 + $0x10] sm:$0xff] }
  0x56   : > { %v626_v50 = vshll.u32 %v2926_v23, 16  ;;  %v632_v62 = vshll.u32 %v2929_v5, 16  ;;  %v636_v53 = vshrl.u32 %v2929_v5, 16  ;;  %v433_v38 = vrot.slane %v431_v13, 4 }
  0x57   : > { %2372 = vmatmul.msk.bf16.gmra.mxu1 %vm1311_vm6, %v2814_v55  ;;  %2379 = vmatmul.msk.bf16.vlgmr.msra.gmra.mxu3 %vm1311_vm6, %v2886_v3  ;;  %v436_v33 = vrot.slane %v434_v9, 5  ;;  %v442_v57 = vrot.slane %v440_v18, 5  ;;  %v446_v28 = vrot.slane %v444_v36, 4  ;;  %v805_v17 = vrot.slane %v803_v27, 4 }
  0x58   : > { %1700 = vmatpush.bf16.msra.mxu0 %v2417_v20  ;;  %2424 = vmatpush.bf16.msra.mxu2 %v2417_v20  ;;  %v806_v63 = vrot.slane %v2952_v40, 5  ;;  %v625_v56 = vrot.slane %v623_v51, 4  ;;  %v634_v11 = vrot.slane %v632_v62, 5  ;;  %v294_v20 = vld [vmem:[%s2529_s28 + $0xa4] sm:$0x1] }
  0x59   : > { %1041 = vrot.lane.b32.xlu0 %v2672_v45, %s2473_s9  ;;  %v437_v8 = vor.u32 %v436_v33, %v433_v38  ;;  %v642_v36 = vshll.u32 %v294_v20, 16  ;;  %v2412_v38 = vld [vmem:[%s3652_s1] sm:$0xff] }
  0x5c   : > { %1226 = vrot.lane.b32.xlu1 %v2827_v6, %s2475_s11  ;;  %1701 = vmatpush.bf16.msra.mxu0 %v2416_v46 }
  0x5d   : > { %1278 = vrot.lane.b32.xlu2 %v2841_v15, %s2474_s10  ;;  %2425 = vmatpush.bf16.msra.mxu2 %v2416_v46 }
  0x61   : > { %1191 = vrot.lane.b32.xlu0 %v2784_v10, %s2472_s8 }
  0x64   : > { %1296 = vrot.lane.b32.xlu1 %v2853_v26, %s2474_s10 }
  0x65   : > { %1156 = vrot.lane.b32.xlu2 %v2732_v24, %s2469_s29  ;;  %v799_v24 = vrot.slane %v2882_v35, 5 }
  0x67   : > { %2373 = vmatmul.msk.bf16.gmra.mxu1 %vm1311_vm6, %v2864_v41  ;;  %v800_v19 = vsel %vm2532_vm2, %v798_v52, %v799_v24  ;;  %v447_v52 = vor.u32 %v446_v28, %v442_v57  ;;  %v450_v24 = vshll.u32 %v2764_v60, 16  ;;  %v807_v60 = vsel %vm2532_vm2, %v805_v17, %v806_v63 }
  0x68   : > { %v1068_v58 = vunpack.c.l.b16 %v800_v19  ;;  %v644_v28 = vrot.slane %v642_v36, 5  ;;  %v296_v36 = vld [vmem:[%s2529_s28 + $0xac] sm:$0xf] }
  0x69   : > { %1025 = vrot.lane.b32.xlu0 %v2659_v34, %s2473_s9  ;;  %v981_v34 = vunpack.c.l.b16 %v419_v29  ;;  %v628_v29 = vrot.slane %v626_v50, 5  ;;  %v448_v16 = vrot.slane %v447_v52, 4  ;;  %v452_v19 = vrot.slane %v450_v24, 5 }
  0x6a   : > { %v2931_v42 = vpack.c.b16 %v1068_v58, %v1067_v21  ;;  %v2413_v58 = vld [vmem:[%s3652_s1 + $0x8] sm:$0xff]  ;;  %v1070_v50 = vunpack.c.l.b16 %v807_v60  ;;  %v2256_v60 = vrot.slane %v2926_v23, 9 }
  0x6b   : > { %v2915_v54 = vpack.c.b16 %v982_v14, %v981_v34  ;;  %v638_v34 = vrot.slane %v636_v53, 4  ;;  %v438_v14 = vrot.slane %v437_v8, 4  ;;  %v2987_v53 = vld [vmem:[%s2529_s28 + $0x9c] sm:$0xff] }
  0x6c   : > { %1175 = vrot.lane.b32.xlu1 %v2841_v15, %s2472_s8 }
  0x6d   : > { %1261 = vrot.lane.b32.xlu2 %v2900_v12, %s2470_s30  ;;  %v443_v46 = vsel %vm2572_vm5, %v438_v14, %v442_v57  ;;  %v639_v18 = vor.u32 %v638_v34, %v634_v11 }
  0x6e   : > { %v983_v13 = vunpack.c.l.b16 %v443_v46  ;;  %v1242_v17 = vpop.permute.xlu2 %1241  ;;  %v841_v46 = vrot.slane %v294_v20, 5 }
  0x6f   : > { %v640_v57 = vrot.slane %v639_v18, 4  ;;  %v295_v18 = vld [vmem:[%s2529_s28 + $0xa8] sm:$0xf] }
  0x71   : > { %1140 = vrot.lane.b32.xlu0 %v2777_v7, %s2469_s29  ;;  %v2415_v7 = vld [vmem:[%s3652_s1 + $0x18] sm:$0xff] }
  0x72   : > { %1702 = vmatpush.bf16.msra.mxu0 %v2415_v7  ;;  %2426 = vmatpush.bf16.msra.mxu2 %v2415_v7  ;;  %v453_v7 = vsel %vm2572_vm5, %v448_v16, %v452_v19 }
  0x73   : > { %v984_v9 = vunpack.c.l.b16 %v453_v7 }
  0x74   : > { %1280 = vrot.lane.b32.xlu1 %v2915_v54, %s2474_s10 }
  0x75   : > { %1105 = vrot.lane.b32.xlu2 %v2622_v48, %s2471_s7  ;;  %v2251_v48 = vrot.slane %v2934_v25, 9  ;;  %v2984_v62 = vpack.c.b16 %v984_v9, %v983_v13 }
  0x76   : > { %1703 = vmatpush.bf16.msra.mxu0 %v2414_v0  ;;  %2427 = vmatpush.bf16.msra.mxu2 %v2414_v0  ;;  %v645_v0 = vsel %vm2572_vm5, %v640_v57, %v644_v28  ;;  %v656_v57 = vshll.u32 %v296_v36, 16  ;;  %v660_v28 = vshrl.u32 %v296_v36, 16 }
  0x77   : > { %2374 = vmatmul.msk.bf16.gmra.mxu1 %vm1311_vm6, %v2931_v42  ;;  %v804_v21 = vsel %vm2532_vm2, %v2251_v48, %v803_v27  ;;  %v629_v27 = vor.u32 %v628_v29, %v625_v56  ;;  %v1000_v24 = vunpack.c.l.b16 %v645_v0 }
  0x78   : > { %v1069_v51 = vunpack.c.l.b16 %v804_v21 }
  0x79   : > { %1245 = vrot.lane.b32.xlu0 %v2940_v30, %s2470_s30  ;;  %v630_v33 = vrot.slane %v629_v27, 4 }
  0x7a   : > { %1704 = vmatpush.bf16.msra.mxu0 %v2413_v58  ;;  %2428 = vmatpush.bf16.msra.mxu2 %v2413_v58  ;;  %v2994_v48 = vpack.c.b16 %v1070_v50, %v1069_v51 }
  0x7b   : > { %v635_v63 = vsel %vm2572_vm5, %v630_v33, %v634_v11  ;;  %v2394_v11 = vld [vmem:[%s2529_s28] sm:$0xff]  ;;  %v650_v33 = vshll.u32 %v295_v18, 16 }
  0x7c   : > { %1158 = vrot.lane.b32.xlu1 %v2900_v12, %s2469_s29  ;;  %v999_v52 = vunpack.c.l.b16 %v635_v63 }
  0x7d   : > { %1210 = vrot.lane.b32.xlu2 %v2679_v49, %s2475_s11 }
  0x7e   : > { %1705 = vmatpush.bf16.msra.mxu0 %v2412_v38  ;;  %2429 = vmatpush.bf16.msra.mxu2 %v2412_v38  ;;  %v647_v38 = vshrl.u32 %v295_v18, 16 }
  0x81   : > { %1123 = vrot.lane.b32.xlu0 %v2827_v6, %s2471_s7 }
  0x82   : > { %v1137_v8 = vpop.permute.xlu1 %1136 }
  0x84   : > { %1263 = vrot.lane.b32.xlu1 %v2987_v53, %s2470_s30 }
  0x85   : > { %1043 = vrot.lane.b32.xlu2 %v2784_v10, %s2473_s9  ;;  %v3010_v10 = vpack.c.b16 %v1000_v24, %v999_v52 }
  0x87   : > { %2375 = vmatmul.msk.bf16.gmra.mxu1 %vm1311_vm6, %v2994_v48 }
  0x89   : > { %1228 = vrot.lane.b32.xlu0 %v2886_v3, %s2475_s11 }
  0x8b   : > { %v1102_v56 = vpop.permute.xlu0 %1101 }
  0x8c   : > { %1107 = vrot.lane.b32.xlu1 %v2679_v49, %s2471_s7  ;;  %v838_v49 = vrot.slane %v2929_v5, 5 }
  0x8d   : > { %1193 = vrot.lane.b32.xlu2 %v2853_v26, %s2472_s8 }
  0x8e   : > { %v840_v58 = vrot.slane %v838_v49, 4 }
  0x8f   : > { %v1207_v29 = vpop.permute.xlu2 %1206 }
  0x90   : > { %v842_v5 = vsel %vm2532_vm2, %v840_v58, %v841_v46 }
  0x91   : > { %1298 = vrot.lane.b32.xlu0 %v3010_v10, %s2474_s10  ;;  %v1080_v9 = vunpack.c.l.b16 %v842_v5 }
  0x92   : > { %v1172_v34 = vpop.permute.xlu1 %1171 }
  0x93   : > { %v1022_v14 = vpop.permute.xlu0 %1021 }
  0x94   : > { %1212 = vrot.lane.b32.xlu1 %v2748_v39, %s2475_s11  ;;  %v1314_v16 = vsel %vm1311_vm6, %v2394_v11, %v1022_v14  ;;  %v649_v11 = vrot.slane %v647_v38, 4  ;;  %v658_v14 = vrot.slane %v656_v57, 5 }
  0x95   : > { %1027 = vrot.lane.b32.xlu2 %v2841_v15, %s2473_s9  ;;  %v1362_v19 = vsel %vm1360_vm7, %v1314_v16, %v1102_v56  ;;  %v839_v15 = vsel %vm2532_vm2, %v2256_v60, %v838_v49  ;;  %v845_v56 = vrot.slane %v296_v36, 5  ;;  %v662_v16 = vrot.slane %v660_v28, 4 }
  0x96   : > { %v1395_v7 = vsel %vm1393_vm8, %v1362_v19, %v1137_v8  ;;  %v1079_v13 = vunpack.c.l.b16 %v839_v15  ;;  %v3053_v8 = vld [vmem:[%s2529_s28 + $0x6c] sm:$0xff]  ;;  %v2257_v49 = vrot.slane %v295_v18, 9 }
  0x97   : > { %2376 = vmatmul.msk.bf16.gmra.mxu1 %vm1311_vm6, %v2718_v44  ;;  %v1120_v21 = vpop.permute.xlu2 %1119  ;;  %v1428_v27 = vsel %vm1426_vm9, %v1395_v7, %v1172_v34  ;;  %v652_v34 = vrot.slane %v650_v33, 5  ;;  %v847_v19 = vrot.slane %v845_v56, 4  ;;  %v3082_v33 = vld [vmem:[%s2529_s28 + $0xa8] sm:$0xff] }
  0x98   : > { %v3036_v20 = vpack.c.b16 %v1080_v9, %v1079_v13  ;;  %v1461_v50 = vsel %vm1459_vm10, %v1428_v27, %v1207_v29  ;;  %v297_v29 = vld [vmem:[%s2529_s28 + $0xb0] sm:$0x1]  ;;  %v846_v5 = vsel %vm2532_vm2, %v2257_v49, %v845_v56  ;;  %v663_v9 = vor.u32 %v662_v16, %v658_v14 }
  0x99   : > { %1177 = vrot.lane.b32.xlu0 %v2915_v54, %s2472_s8  ;;  %v1494_v0 = vsel %vm1492_vm11, %v1461_v50, %v1242_v17  ;;  %v848_v60 = vrot.slane %v297_v29, 5  ;;  %v666_v15 = vshll.u32 %v297_v29, 16  ;;  %v653_v13 = vor.u32 %v652_v34, %v649_v11 }
  0x9a   : > { %v1040_v23 = vpop.permute.xlu1 %1039  ;;  %2380 = vmatmul.msk.bf16.gmra.mxu3 %vm1311_vm6, %v3036_v20  ;;  %v1081_v27 = vunpack.c.l.b16 %v846_v5  ;;  %v664_v28 = vrot.slane %v663_v9, 4  ;;  %v455_v56 = vshrl.u32 %v2820_v2, 16  ;;  %v458_v29 = vshll.u32 %v2820_v2, 16  ;;  %v3119_v9 = vld [vmem:[%s2529_s28 + $0x48] sm:$0xff] }
  0x9b   : > { %v1341_v46 = vsel %vm1311_vm6, %v3053_v8, %v1040_v23  ;;  %v849_v7 = vsel %vm2532_vm2, %v847_v19, %v848_v60  ;;  %v654_v57 = vrot.slane %v653_v13, 4  ;;  %v464_v11 = vshll.u32 %v2806_v37, 16 }
  0x9c   : > { %1045 = vrot.lane.b32.xlu1 %v2853_v26, %s2473_s9  ;;  %v3049_v26 = vld [vmem:[%s2529_s28 + $0x3c] sm:$0xff]  ;;  %v1082_v18 = vunpack.c.l.b16 %v849_v7  ;;  %v1380_v36 = vsel %vm1360_vm7, %v1341_v46, %v1120_v21  ;;  %v468_v34 = vshrl.u32 %v2806_v37, 16  ;;  %v3111_v46 = vld [vmem:[%s2529_s28 + $0xb4] sm:$0xf]  ;;  %v460_v5 = vrot.slane %v458_v29, 5 }
  0x9d   : > { %1142 = vrot.lane.b32.xlu2 %v2940_v30, %s2469_s29  ;;  %v466_v7 = vrot.slane %v464_v11, 5  ;;  %v3140_v11 = vld [vmem:[%s2529_s28 + $0xbc] sm:$0x1] }
  0x9e   : > { %v3078_v50 = vpack.c.b16 %v1082_v18, %v1081_v27  ;;  %v470_v13 = vrot.slane %v468_v34, 4  ;;  %v671_v27 = vshrl.u32 %v3111_v46, 16  ;;  %v674_v18 = vshll.u32 %v3111_v46, 16 }
  0x9f   : > { %v1225_v51 = vpop.permute.xlu2 %1224 }
  0xa1   : > { %1282 = vrot.lane.b32.xlu0 %v2984_v62, %s2474_s10 }
  0xa3   : > { %v1277_v63 = vpop.permute.xlu0 %1276 }
  0xa4   : > { %1195 = vrot.lane.b32.xlu1 %v3010_v10, %s2472_s8  ;;  %v1527_v52 = vsel %vm1525_vm12, %v1494_v0, %v1277_v63  ;;  %v3058_v24 = vpop.f32.mrf.mxu1  ;;  %v668_v63 = vrot.slane %v666_v15, 5  ;;  %v457_v15 = vrot.slane %v455_v56, 4  ;;  %v676_v56 = vrot.slane %v674_v18, 5 }
  0xa5   : > { %1706 = vmatmul.bf16.vlgmr.msra.gmra.mxu0 %v1527_v52  ;;  %1247 = vrot.lane.b32.xlu2 %v3049_v26, %s2470_s30  ;;  %v659_v52 = vsel %vm2572_vm5, %v654_v57, %v658_v14 }
  0xa6   : > { %v1190_v17 = vpop.permute.xlu1 %1189  ;;  %v1001_v2 = vunpack.c.l.b16 %v659_v52  ;;  %v461_v57 = vor.u32 %v460_v5, %v457_v15  ;;  %v690_v15 = vshll.u32 %v3140_v11, 16 }
  0xa7   : > { %2377 = vmatmul.msk.bf16.gmra.mxu1 %vm1311_vm6, %v2738_v32  ;;  %v1295_v58 = vpop.permute.xlu2 %1294 }
  0xa9   : > { %1160 = vrot.lane.b32.xlu0 %v2987_v53, %s2469_s29 }
  0xaa   : > { %2381 = vmatmul.msk.bf16.gmra.mxu3 %vm1311_vm6, %v3078_v50 }
  0xab   : > { %v1155_v32 = vpop.permute.xlu0 %1154 }
  0xac   : > { %1029 = vrot.lane.b32.xlu1 %v2915_v54, %s2473_s9  ;;  %v3076_v23 = vpop.f32.mrf.mxu1  ;;  %v1413_v38 = vsel %vm1393_vm8, %v1380_v36, %v1155_v32 }
  0xad   : > { %1125 = vrot.lane.b32.xlu2 %v2886_v3, %s2471_s7  ;;  %v1446_v54 = vsel %vm1426_vm9, %v1413_v38, %v1190_v17  ;;  %v669_v3 = vsel %vm2572_vm5, %v664_v28, %v668_v63  ;;  %v471_v28 = vor.u32 %v470_v13, %v466_v7 }
  0xae   : > { %v1024_v0 = vpop.permute.xlu1 %1023  ;;  %v1479_v16 = vsel %vm1459_vm10, %v1446_v54, %v1225_v51  ;;  %v1002_v60 = vunpack.c.l.b16 %v669_v3  ;;  %v3114_v51 = vld [vmem:[%s2529_s28 + $0xb8] sm:$0xf]  ;;  %v2456_v54 = vld [vmem:[%s2529_s28 + $0xc] sm:$0xff] }
  0xaf   : > { %v3088_v21 = vpop.permute.xlu2 %1173  ;;  %v680_v36 = vshll.u32 %v3114_v51, 16  ;;  %v684_v38 = vshrl.u32 %v3114_v51, 16  ;;  %v1317_v52 = vsel %vm1311_vm6, %v2456_v54, %v1024_v0 }
  0xb0   : > { %v3125_v32 = vpack.c.b16 %v1002_v60, %v1001_v2 }
  0xb1   : > { %1265 = vrot.lane.b32.xlu0 %v3082_v33, %s2470_s30  ;;  %v682_v34 = vrot.slane %v680_v36, 5 }
  0xb3   : > { %v1260_v17 = vpop.permute.xlu0 %1259 }
  0xb4   : > { %v1512_v49 = vsel %vm1492_vm11, %v1479_v16, %v1260_v17  ;;  %1144 = vrot.lane.b32.xlu1 %v3049_v26, %s2469_s29  ;;  %v3105_v14 = vpop.f32.mrf.mxu1  ;;  %v462_v17 = vrot.slane %v461_v57, 4 }
  0xb5   : > { %v1554_v19 = vsel %vm1525_vm12, %v1512_v49, %v1295_v58  ;;  %1230 = vrot.lane.b32.xlu2 %v3036_v20, %s2475_s11  ;;  %v472_v49 = vrot.slane %v471_v28, 4  ;;  %v692_v28 = vrot.slane %v690_v15, 5 }
  0xb6   : > { %1751 = vmatmul.bf16.vlgmr.msra.gmra.mxu2 %v1554_v19  ;;  %v1139_v37 = vpop.permute.xlu1 %1138  ;;  %v467_v13 = vsel %vm2572_vm5, %v462_v17, %v466_v7 }
  0xb7   : > { %2378 = vmatmul.msk.bf16.gmra.mxu1 %vm1311_vm6, %v2827_v6  ;;  %v1279_v58 = vpop.permute.xlu2 %1278  ;;  %v474_v6 = vshll.u32 %v2825_v4, 16  ;;  %v686_v4 = vrot.slane %v684_v38, 4 }
  0xb9   : > { %1109 = vrot.lane.b32.xlu0 %v2748_v39, %s2471_s7  ;;  %v673_v39 = vrot.slane %v671_v27, 4  ;;  %v476_v0 = vrot.slane %v474_v6, 5  ;;  %v687_v5 = vor.u32 %v686_v4, %v682_v34  ;;  %v492_v4 = vshrl.u32 %v2860_v31, 16 }
  0xbb   : > { %v1104_v63 = vpop.permute.xlu0 %1103  ;;  %v677_v60 = vor.u32 %v676_v56, %v673_v39  ;;  %v477_v27 = vsel %vm2572_vm5, %v472_v49, %v476_v0  ;;  %v688_v7 = vrot.slane %v687_v5, 4  ;;  %v479_v56 = vshrl.u32 %v2879_v61, 16 }
  0xbc   : > { %1249 = vrot.lane.b32.xlu1 %v3119_v9, %s2470_s30  ;;  %v3134_v3 = vpop.f32.mrf.mxu1  ;;  %v1364_v29 = vsel %vm1360_vm7, %v1317_v52, %v1104_v63  ;;  %v985_v63 = vunpack.c.l.b16 %v467_v13  ;;  %v986_v54 = vunpack.c.l.b16 %v477_v27 }
  0xbd   : > { %1300 = vrot.lane.b32.xlu2 %v3125_v32, %s2474_s10  ;;  %v1397_v2 = vsel %vm1393_vm8, %v1364_v29, %v1139_v37  ;;  %v678_v57 = vrot.slane %v677_v60, 4  ;;  %v488_v29 = vshll.u32 %v2860_v31, 16  ;;  %v693_v17 = vsel %vm2572_vm5, %v688_v7, %v692_v28 }
  0xbe   : > { %v1244_v16 = vpop.permute.xlu1 %1243  ;;  %v1430_v18 = vsel %vm1426_vm9, %v1397_v2, %v3088_v21  ;;  %v481_v0 = vrot.slane %v479_v56, 4  ;;  %v1004_v60 = vunpack.c.l.b16 %v693_v17  ;;  %v498_v28 = vshll.u32 %v2882_v35, 16 }
  0xbf   : > { %v1157_v19 = vpop.permute.xlu2 %1156  ;;  %v490_v15 = vrot.slane %v488_v29, 5  ;;  %v855_v7 = vrot.slane %v3140_v11, 5 }
  0xc1   : > { %1214 = vrot.lane.b32.xlu0 %v2814_v55, %s2475_s11 }
  0xc3   : > { %v1209_v36 = vpop.permute.xlu0 %1208 }
  0xc4   : > { %v1463_v38 = vsel %vm1459_vm10, %v1430_v18, %v1209_v36  ;;  %1127 = vrot.lane.b32.xlu1 %v3036_v20, %s2471_s7  ;;  %v3155_v37 = vpop.f32.mrf.mxu1  ;;  %v482_v20 = vshll.u32 %v2879_v61, 16 }
  0xc5   : > { %v1496_v6 = vsel %vm1492_vm11, %v1463_v38, %v1244_v16  ;;  %1179 = vrot.lane.b32.xlu2 %v2984_v62, %s2472_s8  ;;  %v683_v16 = vsel %vm2572_vm5, %v678_v57, %v682_v34  ;;  %v852_v57 = vrot.slane %v3114_v51, 5 }
  0xc6   : > { %v1122_v52 = vpop.permute.xlu1 %1121  ;;  %v1530_v21 = vsel %vm1525_vm12, %v1496_v6, %v1279_v58  ;;  %v3171_v58 = vpack.c.b16 %v986_v54, %v985_v63  ;;  %v484_v2 = vrot.slane %v482_v20, 5  ;;  %v1003_v31 = vunpack.c.l.b16 %v683_v16 }
  0xc7   : > { %1711 = vmatmul.bf16.gmra.mxu0 %v1530_v21  ;;  %v1262_v39 = vpop.permute.xlu2 %1261  ;;  %v854_v6 = vrot.slane %v852_v57, 4 }
  0xc8   : > { %v485_v27 = vor.u32 %v484_v2, %v481_v0  ;;  %v3182_v36 = vpack.c.b16 %v1004_v60, %v1003_v31  ;;  %v3214_v60 = vld [vmem:[%s2529_s28 + $0xb4] sm:$0xff] }
  0xc9   : > { %1047 = vrot.lane.b32.xlu0 %v3010_v10, %s2473_s9  ;;  %v494_v10 = vrot.slane %v492_v4, 4 }
  0xca   : > { %v486_v21 = vrot.slane %v485_v27, 4 }
  0xcb   : > { %v1042_v49 = vpop.permute.xlu0 %1041  ;;  %v495_v38 = vor.u32 %v494_v10, %v490_v15 }
  0xcc   : > { %1232 = vrot.lane.b32.xlu1 %v3078_v50, %s2475_s11  ;;  %v3175_v61 = vpop.f32.mrf.mxu1  ;;  %v1344_v34 = vsel %vm1311_vm6, %v2696_v59, %v1042_v49  ;;  %v2258_v59 = vrot.slane %v3111_v46, 9  ;;  %v856_v46 = vsel %vm2532_vm2, %v854_v6, %v855_v7  ;;  %v491_v2 = vsel %vm2572_vm5, %v486_v21, %v490_v15  ;;  %v3244_v21 = vld [vmem:[%s2529_s28 + $0x54] sm:$0xff] }
  0xcd   : > { %1284 = vrot.lane.b32.xlu2 %v3171_v58, %s2474_s10  ;;  %v1382_v18 = vsel %vm1360_vm7, %v1344_v34, %v1122_v52  ;;  %v496_v56 = vrot.slane %v495_v38, 4  ;;  %v1084_v29 = vunpack.c.l.b16 %v856_v46 }
  0xce   : > { %v1227_v5 = vpop.permute.xlu1 %1226  ;;  %v1415_v63 = vsel %vm1393_vm8, %v1382_v18, %v1157_v19  ;;  %v853_v35 = vsel %vm2532_vm2, %v2258_v59, %v852_v57  ;;  %v500_v19 = vrot.slane %v498_v28, 5  ;;  %v2457_v18 = vld [vmem:[%s2529_s28 + $0x18] sm:$0xff]  ;;  %v3231_v57 = vld [vmem:[%s2529_s28 + $0xc0] sm:$0xf]  ;;  %v3234_v28 = vld [vmem:[%s2529_s28 + $0xc4] sm:$0xf] }
  0xcf   : > { %v1106_v13 = vpop.permute.xlu2 %1105  ;;  %v1083_v20 = vunpack.c.l.b16 %v853_v35 }
  0xd0   : > { %v501_v31 = vsel %vm2572_vm5, %v496_v56, %v500_v19  ;;  %v867_v56 = vshll.u32 %v3234_v28, 16 }
  0xd1   : > { %1197 = vrot.lane.b32.xlu0 %v3125_v32, %s2472_s8  ;;  %v3205_v0 = vpack.c.b16 %v1084_v29, %v1083_v20  ;;  %v988_v34 = vunpack.c.l.b16 %v501_v31 }
  0xd2   : > { %v869_v29 = vrot.slane %v867_v56, 5 }
  0xd3   : > { %v1192_v54 = vpop.permute.xlu0 %1191  ;;  %2382 = vmatmul.msk.bf16.gmra.mxu3 %vm1311_vm6, %v3205_v0 }
  0xd4   : > { %v1448_v52 = vsel %vm1426_vm9, %v1415_v63, %v1192_v54  ;;  %1302 = vrot.lane.b32.xlu1 %v3182_v36, %s2474_s10  ;;  %v3194_v51 = vpop.f32.mrf.mxu1  ;;  %v858_v63 = vshrl.u32 %v3231_v57, 16 }
  0xd5   : > { %v1481_v11 = vsel %vm1459_vm10, %v1448_v52, %v1227_v5  ;;  %1162 = vrot.lane.b32.xlu2 %v3082_v33, %s2469_s29  ;;  %v861_v52 = vshll.u32 %v3231_v57, 16 }
  0xd6   : > { %v1297_v4 = vpop.permute.xlu1 %1296  ;;  %v1514_v16 = vsel %vm1492_vm11, %v1481_v11, %v1262_v39  ;;  %v860_v19 = vrot.slane %v858_v63, 4 }
  0xd7   : > { %v1557_v17 = vsel %vm1525_vm12, %v1514_v16, %v1297_v4  ;;  %v1211_v49 = vpop.permute.xlu2 %1210  ;;  %v863_v20 = vrot.slane %v861_v52, 5  ;;  %v3255_v16 = vld [vmem:[%s2529_s28 + $0xc8] sm:$0x1] }
  0xd8   : > { %1756 = vmatmul.bf16.gmra.mxu2 %v1557_v17 }
  0xd9   : > { %1031 = vrot.lane.b32.xlu0 %v2984_v62, %s2473_s9  ;;  %v987_v62 = vunpack.c.l.b16 %v491_v2 }
  0xdb   : > { %v1026_v39 = vpop.permute.xlu0 %1025  ;;  %v3224_v27 = vpack.c.b16 %v988_v34, %v987_v62  ;;  %v864_v62 = vor.u32 %v863_v20, %v860_v19  ;;  %v512_v19 = vshll.u32 %v2918_v22, 16  ;;  %v516_v20 = vshrl.u32 %v2918_v22, 16 }
  0xdc   : > { %1181 = vrot.lane.b32.xlu1 %v3171_v58, %s2472_s8  ;;  %v3220_v10 = vpop.f32.mrf.mxu1  ;;  %v1320_v38 = vsel %vm1311_vm6, %v2457_v18, %v1026_v39 }
  0xdd   : > { %1267 = vrot.lane.b32.xlu2 %v3214_v60, %s2470_s30  ;;  %v1366_v6 = vsel %vm1360_vm7, %v1320_v38, %v1106_v13  ;;  %v871_v13 = vshrl.u32 %v3234_v28, 16  ;;  %v3268_v38 = vld [vmem:[%s2529_s28 + $0xc0] sm:$0xff] }
  0xde   : > { %v1176_v15 = vpop.permute.xlu1 %1175 }
  0xdf   : > { %v1044_v5 = vpop.permute.xlu2 %1043  ;;  %v873_v4 = vrot.slane %v871_v13, 4 }
  0xe1   : > { %1146 = vrot.lane.b32.xlu0 %v3119_v9, %s2469_s29  ;;  %v874_v34 = vor.u32 %v873_v4, %v869_v29 }
  0xe3   : > { %v1141_v59 = vpop.permute.xlu0 %1140 }
  0xe4   : > { %1286 = vrot.lane.b32.xlu1 %v3224_v27, %s2474_s10  ;;  %v3239_v7 = vpop.f32.mrf.mxu1  ;;  %v1399_v54 = vsel %vm1393_vm8, %v1366_v6, %v1141_v59  ;;  %v865_v59 = vrot.slane %v864_v62, 4  ;;  %v875_v6 = vrot.slane %v874_v34, 4  ;;  %v514_v34 = vrot.slane %v512_v19, 5 }
  0xe5   : > { %1111 = vrot.lane.b32.xlu2 %v2814_v55, %s2471_s7  ;;  %v1432_v11 = vsel %vm1426_vm9, %v1399_v54, %v1176_v15  ;;  %v877_v15 = vshll.u32 %v3255_v16, 16 }
  0xe6   : > { %v1281_v35 = vpop.permute.xlu1 %1280  ;;  %v1465_v55 = vsel %vm1459_vm10, %v1432_v11, %v1211_v49  ;;  %v870_v56 = vsel %vm2572_vm5, %v865_v59, %v869_v29  ;;  %v506_v11 = vshll.u32 %v2934_v25, 16 }
  0xe7   : > { %v1194_v46 = vpop.permute.xlu2 %1193  ;;  %v879_v63 = vrot.slane %v877_v15, 5  ;;  %v1168_v29 = vunpack.c.l.b16 %v870_v56  ;;  %v518_v15 = vrot.slane %v516_v20, 4  ;;  %v522_v56 = vshll.u32 %v2952_v40, 16  ;;  %v2459_v40 = vld [vmem:[%s2529_s28 + $0x24] sm:$0xff] }
  0xe8   : > { %v508_v62 = vrot.slane %v506_v11, 5 }
  0xe9   : > { %1251 = vrot.lane.b32.xlu0 %v3244_v21, %s2470_s30  ;;  %v880_v13 = vsel %vm2572_vm5, %v875_v6, %v879_v63  ;;  %v524_v19 = vrot.slane %v522_v56, 5 }
  0xeb   : > { %v1246_v17 = vpop.permute.xlu0 %1245 }
  0xec   : > { %v1498_v2 = vsel %vm1492_vm11, %v1465_v55, %v1246_v17  ;;  %1164 = vrot.lane.b32.xlu1 %v3214_v60, %s2469_s29  ;;  %v3261_v31 = vpop.f32.mrf.mxu1  ;;  %v2458_v55 = vld [vmem:[%s2529_s28 + $0x84] sm:$0xff] }
  0xed   : > { %v1533_v39 = vsel %vm1525_vm12, %v1498_v2, %v1281_v35  ;;  %1216 = vrot.lane.b32.xlu2 %v2864_v41, %s2475_s11  ;;  %v503_v35 = vshrl.u32 %v2934_v25, 16  ;;  %v1347_v17 = vsel %vm1311_vm6, %v2458_v55, %v1044_v5  ;;  %v1169_v2 = vunpack.c.l.b16 %v880_v13 }
  0xee   : > { %1716 = vmatmul.bf16.gmra.mxu0 %v1533_v39  ;;  %v1159_v18 = vpop.permute.xlu1 %1158 }
  0xef   : > { %v1028_v49 = vpop.permute.xlu2 %1027  ;;  %v505_v39 = vrot.slane %v503_v35, 4  ;;  %v1170_v5 = vpack.c.b16 %v1169_v2, %v1168_v29 }
  0xf1   : > { %1129 = vrot.lane.b32.xlu0 %v3078_v50, %s2471_s7  ;;  %v509_v63 = vor.u32 %v508_v62, %v505_v39 }
  0xf3   : > { %v1124_v54 = vpop.permute.xlu0 %1123 }
  0xf4   : > { %1269 = vrot.lane.b32.xlu1 %v3268_v38, %s2470_s30  ;;  %v3274_v52 = vpop.f32.mrf.mxu1 }
  0xf5   : > { %1049 = vrot.lane.b32.xlu2 %v3125_v32, %s2473_s9  ;;  %v1384_v32 = vsel %vm1360_vm7, %v1347_v17, %v1124_v54  ;;  %v519_v54 = vor.u32 %v518_v15, %v514_v34 }
  0xf6   : > { %v1264_v50 = vpop.permute.xlu1 %1263  ;;  %v1417_v59 = vsel %vm1393_vm8, %v1384_v32, %v1159_v18 }
  0xf7   : > { %v1143_v4 = vpop.permute.xlu2 %1142  ;;  %v1450_v13 = vsel %vm1426_vm9, %v1417_v59, %v1194_v46  ;;  %v520_v11 = vrot.slane %v519_v54, 4  ;;  %v1323_v46 = vsel %vm1311_vm6, %v2459_v40, %v1028_v49  ;;  %v2259_v49 = vrot.slane %v3231_v57, 9 }
  0xf9   : > { %1234 = vrot.lane.b32.xlu0 %v3205_v0, %s2475_s11 }
  0xfb   : > { %v1229_v25 = vpop.permute.xlu0 %1228 }
  0xfc   : > { %1113 = vrot.lane.b32.xlu1 %v2864_v41, %s2471_s7  ;;  %v3294_v22 = vpop.f32.mrf.mxu1  ;;  %v1483_v18 = vsel %vm1459_vm10, %v1450_v13, %v1229_v25  ;;  %v510_v41 = vrot.slane %v509_v63, 4 }
  0xfd   : > { %1199 = vrot.lane.b32.xlu2 %v3182_v36, %s2472_s8  ;;  %v1516_v55 = vsel %vm1492_vm11, %v1483_v18, %v1264_v50  ;;  %v525_v50 = vsel %vm2572_vm5, %v520_v11, %v524_v19  ;;  %v3340_v11 = vld [vmem:[%s2529_s28 + $0xd0] sm:$0xf] }
  0xfe   : > { %v1108_v6 = vpop.permute.xlu1 %1107  ;;  %v515_v2 = vsel %vm2572_vm5, %v510_v41, %v514_v34  ;;  %v990_v25 = vunpack.c.l.b16 %v525_v50  ;;  %v889_v34 = vrot.slane %v3255_v16, 5  ;;  %v3337_v41 = vld [vmem:[%s2529_s28 + $0xcc] sm:$0xf] }
  0xff   : > { %v1248_v35 = vpop.permute.xlu2 %1247  ;;  %v1368_v62 = vsel %vm1360_vm7, %v1323_v46, %v1108_v6  ;;  %v989_v15 = vunpack.c.l.b16 %v515_v2  ;;  %v895_v40 = vshll.u32 %v3337_v41, 16  ;;  %v901_v46 = vshll.u32 %v3340_v11, 16 }
 0x100   : > { %v1401_v54 = vsel %vm1393_vm8, %v1368_v62, %v1143_v4  ;;  %v905_v2 = vshrl.u32 %v3340_v11, 16 }
 0x101   : > { %1304 = vrot.lane.b32.xlu0 %v1170_v5, %s2474_s10  ;;  %v3328_v13 = vpack.c.b16 %v990_v25, %v989_v15 }
 0x103   : > { %v1299_v20 = vpop.permute.xlu0 %1298 }
 0x104   : > { %v1560_v17 = vsel %vm1525_vm12, %v1516_v55, %v1299_v20  ;;  %1218 = vrot.lane.b32.xlu1 %v2931_v42, %s2475_s11  ;;  %v3306_v32 = vpop.f32.mrf.mxu1  ;;  %v3346_v55 = vld [vmem:[%s2529_s28 + $0x60] sm:$0xff] }
 0x105   : > { %1761 = vmatmul.bf16.gmra.mxu2 %v1560_v17  ;;  %1033 = vrot.lane.b32.xlu2 %v3171_v58, %s2473_s9  ;;  %v886_v58 = vrot.slane %v3234_v28, 5  ;;  %v892_v17 = vshrl.u32 %v3337_v41, 16 }
 0x106   : > { %v1213_v29 = vpop.permute.xlu1 %1212 }
 0x107   : > { %v1126_v39 = vpop.permute.xlu2 %1125  ;;  %v888_v63 = vrot.slane %v886_v58, 4  ;;  %v887_v57 = vsel %vm2532_vm2, %v2259_v49, %v886_v58  ;;  %v894_v58 = vrot.slane %v892_v17, 4  ;;  %v903_v49 = vrot.slane %v901_v46, 5  ;;  %v2411_v17 = vld [vmem:[%s2529_s28 + $0xcc] sm:$0xff] }
 0x108   : > { %v1203_v4 = vunpack.c.l.b16 %v887_v57 }
 0x109   : > { %1183 = vrot.lane.b32.xlu0 %v3224_v27, %s2472_s8  ;;  %v890_v28 = vsel %vm2532_vm2, %v888_v63, %v889_v34  ;;  %v907_v63 = vrot.slane %v905_v2, 4 }
 0x10a   : > { %v1204_v18 = vunpack.c.l.b16 %v890_v28 }
 0x10b   : > { %v1178_v59 = vpop.permute.xlu0 %1177 }
 0x10c   : > { %1051 = vrot.lane.b32.xlu1 %v3182_v36, %s2473_s9  ;;  %v3325_v6 = vpop.f32.mrf.mxu1  ;;  %v1434_v56 = vsel %vm1426_vm9, %v1401_v54, %v1178_v59  ;;  %v1205_v20 = vpack.c.b16 %v1204_v18, %v1203_v4  ;;  %v897_v59 = vrot.slane %v895_v40, 5  ;;  %v3361_v54 = vld [vmem:[%s2529_s28 + $0xd4] sm:$0x1] }
 0x10d   : > { %1148 = vrot.lane.b32.xlu2 %v3244_v21, %s2469_s29  ;;  %v1467_v19 = vsel %vm1459_vm10, %v1434_v56, %v1213_v29  ;;  %v908_v56 = vor.u32 %v907_v63, %v903_v49  ;;  %v911_v57 = vshll.u32 %v3361_v54, 16 }
 0x10e   : > { %v1046_v16 = vpop.permute.xlu1 %1045  ;;  %2383 = vmatmul.msk.bf16.gmra.mxu3 %vm1311_vm6, %v1205_v20  ;;  %v1500_v29 = vsel %vm1492_vm11, %v1467_v19, %v1248_v35 }
 0x10f   : > { %v1231_v36 = vpop.permute.xlu2 %1230  ;;  %v1350_v35 = vsel %vm1311_vm6, %v2900_v12, %v1046_v16  ;;  %v909_v16 = vrot.slane %v908_v56, 4  ;;  %v913_v40 = vrot.slane %v911_v57, 5 }
 0x110   : > { %v1386_v4 = vsel %vm1360_vm7, %v1350_v35, %v1126_v39 }
 0x111   : > { %1288 = vrot.lane.b32.xlu0 %v3328_v13, %s2474_s10 }
 0x113   : > { %v1283_v50 = vpop.permute.xlu0 %1282 }
 0x114   : > { %v1536_v62 = vsel %vm1525_vm12, %v1500_v29, %v1283_v50  ;;  %1201 = vrot.lane.b32.xlu1 %v1170_v5, %s2472_s8  ;;  %v3356_v15 = vpop.f32.mrf.mxu1  ;;  %v898_v5 = vor.u32 %v897_v59, %v894_v58  ;;  %v914_v50 = vsel %vm2572_vm5, %v909_v16, %v913_v40 }
 0x115   : > { %1721 = vmatmul.bf16.gmra.mxu0 %v1536_v62  ;;  %1253 = vrot.lane.b32.xlu2 %v3346_v55, %s2470_s30 }
 0x116   : > { %v1196_v25 = vpop.permute.xlu1 %1195 }
 0x117   : > { %v1301_v34 = vpop.permute.xlu2 %1300 }
 0x119   : > { %1166 = vrot.lane.b32.xlu0 %v3268_v38, %s2469_s29  ;;  %v899_v38 = vrot.slane %v898_v5, 4 }
 0x11b   : > { %v1161_v28 = vpop.permute.xlu0 %1160 }
 0x11c   : > { %1035 = vrot.lane.b32.xlu1 %v3224_v27, %s2473_s9  ;;  %v3371_v18 = vpop.f32.mrf.mxu1  ;;  %v1419_v19 = vsel %vm1393_vm8, %v1386_v4, %v1161_v28  ;;  %v904_v27 = vsel %vm2572_vm5, %v899_v38, %v903_v49  ;;  %v1274_v49 = vunpack.c.l.b16 %v914_v50 }
 0x11d   : > { %1131 = vrot.lane.b32.xlu2 %v3205_v0, %s2471_s7  ;;  %v1452_v2 = vsel %vm1426_vm9, %v1419_v19, %v1196_v25  ;;  %v3386_v0 = vld [vmem:[%s3653_s2] ss:$0 sm:$0xff]  ;;  %v1273_v43 = vunpack.c.l.b16 %v904_v27 }
 0x11e   : > { %v1030_v12 = vpop.permute.xlu1 %1029  ;;  %v1485_v29 = vsel %vm1459_vm10, %v1452_v2, %v1231_v36 }
 0x11f   : > { %v1180_v46 = vpop.permute.xlu2 %1179  ;;  %v1275_v36 = vpack.c.b16 %v1274_v49, %v1273_v43 }
 0x121   : > { %1271 = vrot.lane.b32.xlu0 %v2411_v17, %s2470_s30 }
 0x122   : > { %v1707_v39 = vpop.f32.mrf.mxu0 }
 0x123   : > { %v1266_v62 = vpop.permute.xlu0 %1265  ;;  %v1708_v35 = vadd.f32 %v3386_v0, %v1707_v39 }
 0x124   : > { %v1518_v58 = vsel %vm1492_vm11, %v1485_v29, %v1266_v62  ;;  %1150 = vrot.lane.b32.xlu1 %v3346_v55, %s2469_s29  ;;  %v3392_v25 = vpop.f32.mrf.mxu1 }
 0x125   : > { %v1563_v59 = vsel %vm1525_vm12, %v1518_v58, %v1301_v34  ;;  %1236 = vrot.lane.b32.xlu2 %v1205_v20, %s2475_s11  ;;  %v1797_v57 = vadd.f32 %v3058_v24, %v1708_v35  ;;  %v1326_v20 = vsel %vm1311_vm6, %v2940_v30, %v1030_v12 }
 0x126   : > { %1766 = vmatmul.bf16.gmra.mxu2 %v1563_v59  ;;  %v1145_v63 = vpop.permute.xlu1 %1144 }
 0x127   : > { %v1285_v5 = vpop.permute.xlu2 %1284  ;;  %v1876_v38 = vmax.f32 %v1797_v57, 0.0 }
 0x129   : > { %1115 = vrot.lane.b32.xlu0 %v2931_v42, %s2471_s7 }
 0x12a   : > { %v1709_v56 = vpop.f32.mrf.mxu0 }
 0x12b   : > { %v1710_v28 = vadd.f32 %v3386_v0, %v1709_v56  ;;  %v1110_v4 = vpop.permute.xlu0 %1109 }
 0x12c   : > { %1255 = vrot.lane.b32.xlu1 %v3053_v8, %s2470_s30  ;;  %v1370_v19 = vsel %vm1360_vm7, %v1326_v20, %v1110_v4  ;;  %v3407_v17 = vpop.f32.mrf.mxu1 }
 0x12d   : > { %v1799_v34 = vadd.f32 %v3076_v23, %v1710_v28  ;;  %1306 = vrot.lane.b32.xlu2 %v1275_v36, %s2474_s10  ;;  %v1403_v40 = vsel %vm1393_vm8, %v1370_v19, %v1145_v63 }
 0x12e   : > { %v1250_v42 = vpop.permute.xlu1 %1249  ;;  %v1436_v12 = vsel %vm1426_vm9, %v1403_v40, %v1180_v46 }
 0x12f   : > { %v1877_v24 = vmax.f32 %v1799_v34, 0.0  ;;  %v1163_v16 = vpop.permute.xlu2 %1162 }
 0x131   : > { %1220 = vrot.lane.b32.xlu0 %v2994_v48, %s2475_s11  ;;  %v3413_v30 = vpack.c.bf16 %v1877_v24, %v1876_v38 }
 0x133   : > { %v1215_v23 = vpop.permute.xlu0 %1214 }
 0x134   : > { %v1469_v2 = vsel %vm1459_vm10, %v1436_v12, %v1215_v23  ;;  %1117 = vrot.lane.b32.xlu1 %v2994_v48, %s2471_s7  ;;  %v1841_v29 = vpop.f32.mrf.mxu1 }
 0x135   : > { %v1502_v39 = vsel %vm1492_vm11, %v1469_v2, %v1250_v42  ;;  %1185 = vrot.lane.b32.xlu2 %v3328_v13, %s2472_s8  ;;  %v2460_v2 = vld [vmem:[%s2529_s28 + $0x78] sm:$0xff] }
 0x136   : > { %v1128_v27 = vpop.permute.xlu1 %1127  ;;  %v1539_v50 = vsel %vm1525_vm12, %v1502_v39, %v1285_v5 }
 0x137   : > { %1726 = vmatmul.bf16.gmra.mxu0 %v1539_v50  ;;  %v1268_v62 = vpop.permute.xlu2 %1267 }
 0x139   : > { %v1752_v58 = vpop.f32.mrf.mxu2  ;;  %1037 = vrot.lane.b32.xlu0 %v3328_v13, %s2473_s9 }
 0x13a   : > { %v1753_v59 = vadd.f32 %v3386_v0, %v1752_v58 }
 0x13b   : > { %v1048_v46 = vpop.permute.xlu0 %1047 }
 0x13c   : > { %1222 = vrot.lane.b32.xlu1 %v2718_v44, %s2475_s11  ;;  %v1353_v48 = vsel %vm1311_vm6, %v2987_v53, %v1048_v46  ;;  %v1843_v5 = vpop.f32.mrf.mxu1  ;;  %v1842_v13 = vadd.f32 %v1841_v29, %v1753_v59 }
 0x13d   : > { %1290 = vrot.lane.b32.xlu2 %v2620_v47, %s2474_s10  ;;  %v1388_v63 = vsel %vm1360_vm7, %v1353_v48, %v1128_v27 }
 0x13e   : > { %v1233_v43 = vpop.permute.xlu1 %1232  ;;  %v1421_v36 = vsel %vm1393_vm8, %v1388_v63, %v1163_v16  ;;  %v1894_v20 = vmax.f32 %v1842_v13, 0.0 }
 0x13f   : > { %v1112_v49 = vpop.permute.xlu2 %1111 }
 0x141   : > { %v1754_v35 = vpop.f32.mrf.mxu2  ;;  %1187 = vrot.lane.b32.xlu0 %v2620_v47, %s2472_s8 }
 0x142   : > { %v1755_v44 = vadd.f32 %v3386_v0, %v1754_v35  ;;  %v1846_v35 = vpop.f32.mrf.mxu3 }
 0x143   : > { %v1198_v53 = vpop.permute.xlu0 %1197 }
 0x144   : > { %v1844_v56 = vadd.f32 %v1843_v5, %v1755_v44  ;;  %v1454_v57 = vsel %vm1426_vm9, %v1421_v36, %v1198_v53  ;;  %v1712_v28 = vpop.f32.mrf.mxu0 }
 0x145   : > { %v1487_v4 = vsel %vm1459_vm10, %v1454_v57, %v1233_v43  ;;  %1152 = vrot.lane.b32.xlu2 %v3053_v8, %s2469_s29  ;;  %v1713_v16 = vadd.f32 %v3386_v0, %v1712_v28 }
 0x146   : > { %v1895_v34 = vmax.f32 %v1844_v56, 0.0  ;;  %v1303_v19 = vpop.permute.xlu1 %1302  ;;  %v1520_v47 = vsel %vm1492_vm11, %v1487_v4, %v1268_v62 }
 0x147   : > { %v1566_v42 = vsel %vm1525_vm12, %v1520_v47, %v1303_v19  ;;  %v1217_v38 = vpop.permute.xlu2 %1216  ;;  %v1802_v8 = vadd.f32 %v3105_v14, %v1713_v16 }
 0x148   : > { %1771 = vmatmul.bf16.gmra.mxu2 %v1566_v42  ;;  %v3443_v24 = vpack.c.bf16 %v1895_v34, %v1894_v20 }
 0x149   : > { %1292 = vrot.lane.b32.xlu0 %v2672_v45, %s2474_s10  ;;  %v1878_v29 = vmax.f32 %v1802_v8, 0.0 }
 0x14a   : > { %v1848_v57 = vpop.f32.mrf.mxu3 }
 0x14b   : > { %v1032_v40 = vpop.permute.xlu0 %1031 }
 0x14c   : > { %v1714_v12 = vpop.f32.mrf.mxu0  ;;  %v1329_v62 = vsel %vm1311_vm6, %v3049_v26, %v1032_v40 }
 0x14d   : > { %v1715_v23 = vadd.f32 %v3386_v0, %v1714_v12  ;;  %1257 = vrot.lane.b32.xlu2 %v2460_v2, %s2470_s30  ;;  %v1372_v48 = vsel %vm1360_vm7, %v1329_v62, %v1112_v49  ;;  %v920_v62 = vrot.slane %v3340_v11, 5 }
 0x14e   : > { %v1182_v39 = vpop.permute.xlu1 %1181 }
 0x14f   : > { %v1804_v27 = vadd.f32 %v3134_v3, %v1715_v23  ;;  %v1050_v50 = vpop.permute.xlu2 %1049 }
 0x150   : > { %v1356_v47 = vsel %vm1311_vm6, %v3082_v33, %v1050_v50 }
 0x151   : > { %v1879_v58 = vmax.f32 %v1804_v27, 0.0 }
 0x153   : > { %v1147_v46 = vpop.permute.xlu0 %1146  ;;  %v3455_v45 = vpack.c.bf16 %v1879_v58, %v1878_v29  ;;  %v2260_v58 = vrot.slane %v3337_v41, 9 }
 0x154   : > { %v1405_v14 = vsel %vm1393_vm8, %v1372_v48, %v1147_v46  ;;  %v922_v46 = vrot.slane %v920_v62, 4  ;;  %v923_v48 = vrot.slane %v3361_v54, 5 }
 0x155   : > { %v1438_v63 = vsel %vm1426_vm9, %v1405_v14, %v1182_v39 }
 0x156   : > { %v1287_v59 = vpop.permute.xlu1 %1286  ;;  %v1471_v3 = vsel %vm1459_vm10, %v1438_v63, %v1217_v38  ;;  %v924_v11 = vsel %vm2532_vm2, %v922_v46, %v923_v48 }
 0x157   : > { %v1200_v43 = vpop.permute.xlu2 %1199 }
 0x15b   : > { %v1252_v5 = vpop.permute.xlu0 %1251  ;;  %v1757_v13 = vpop.f32.mrf.mxu2 }
 0x15c   : > { %v1504_v44 = vsel %vm1492_vm11, %v1471_v3, %v1252_v5  ;;  %v1758_v26 = vadd.f32 %v3386_v0, %v1757_v13  ;;  %v921_v3 = vsel %vm2532_vm2, %v2260_v58, %v920_v62  ;;  %v1309_v13 = vunpack.c.l.b16 %v924_v11 }
 0x15d   : > { %v1542_v36 = vsel %vm1525_vm12, %v1504_v44, %v1287_v59  ;;  %v1308_v41 = vunpack.c.l.b16 %v921_v3  ;;  %vm2173_vm2 = vcmask 1043456  }
 0x15e   : > { %1731 = vmatmul.bf16.gmra.mxu0 %v1542_v36  ;;  %v1847_v53 = vadd.f32 %v1846_v35, %v1758_v26  ;;  %v1165_v49 = vpop.permute.xlu1 %1164 }
 0x15f   : > { %v1034_v56 = vpop.permute.xlu2 %1033  ;;  %v1310_v26 = vpack.c.b16 %v1309_v13, %v1308_v41 }
 0x160   : > { %v1896_v42 = vmax.f32 %v1847_v53, 0.0 }
 0x161   : > { %2384 = vmatmul.msk.bf16.gmra.mxu3 %vm1311_vm6, %v1310_v26 }
 0x163   : > { %v1130_v28 = vpop.permute.xlu0 %1129  ;;  %v1759_v4 = vpop.f32.mrf.mxu2 }
 0x164   : > { %v1760_v20 = vadd.f32 %v3386_v0, %v1759_v4  ;;  %v1390_v16 = vsel %vm1360_vm7, %v1356_v47, %v1130_v28 }
 0x165   : > { %v1423_v2 = vsel %vm1393_vm8, %v1390_v16, %v1165_v49 }
 0x166   : > { %v1849_v34 = vadd.f32 %v1848_v57, %v1760_v20  ;;  %v1270_v19 = vpop.permute.xlu1 %1269  ;;  %v1456_v29 = vsel %vm1426_vm9, %v1423_v2, %v1200_v43 }
 0x167   : > { %v1149_v40 = vpop.permute.xlu2 %1148 }
 0x168   : > { %v1897_v38 = vmax.f32 %v1849_v34, 0.0 }
 0x16a   : > { %v3468_v12 = vpack.c.bf16 %v1897_v38, %v1896_v42  ;;  %v1851_v42 = vpop.f32.mrf.mxu3 }
 0x16b   : > { %v1717_v8 = vpop.f32.mrf.mxu0  ;;  %v1235_v23 = vpop.permute.xlu0 %1234 }
 0x16c   : > { %v1718_v27 = vadd.f32 %v3386_v0, %v1717_v8  ;;  %v1489_v33 = vsel %vm1459_vm10, %v1456_v29, %v1235_v23 }
 0x16d   : > { %v1522_v35 = vsel %vm1492_vm11, %v1489_v33, %v1270_v19 }
 0x16e   : > { %v1114_v39 = vpop.permute.xlu1 %1113  ;;  %v1807_v14 = vadd.f32 %v3155_v37, %v1718_v27  ;;  %v1332_v37 = vsel %vm1311_vm6, %v3119_v9, %v1034_v56 }
 0x16f   : > { %v1254_v50 = vpop.permute.xlu2 %1253  ;;  %v1374_v1 = vsel %vm1360_vm7, %v1332_v37, %v1114_v39 }
 0x170   : > { %v1880_v36 = vmax.f32 %v1807_v14, 0.0  ;;  %v1407_v4 = vsel %vm1393_vm8, %v1374_v1, %v1149_v40 }
 0x172   : > { %v1853_v58 = vpop.f32.mrf.mxu3 }
 0x173   : > { %v1719_v59 = vpop.f32.mrf.mxu0  ;;  %v1305_v63 = vpop.permute.xlu0 %1304 }
 0x174   : > { %v1720_v43 = vadd.f32 %v3386_v0, %v1719_v59  ;;  %v1569_v5 = vsel %vm1525_vm12, %v1522_v35, %v1305_v63 }
 0x175   : > { %1776 = vmatmul.bf16.gmra.mxu2 %v1569_v5 }
 0x176   : > { %v1809_v54 = vadd.f32 %v3175_v61, %v1720_v43  ;;  %v1219_v44 = vpop.permute.xlu1 %1218 }
 0x177   : > { %v1132_v28 = vpop.permute.xlu2 %1131 }
 0x178   : > { %v1881_v53 = vmax.f32 %v1809_v54, 0.0 }
 0x17a   : > { %v3490_v49 = vpack.c.bf16 %v1881_v53, %v1880_v36 }
 0x17b   : > { %v1184_v57 = vpop.permute.xlu0 %1183 }
 0x17c   : > { %v1440_v20 = vsel %vm1426_vm9, %v1407_v4, %v1184_v57 }
 0x17d   : > { %v1473_v9 = vsel %vm1459_vm10, %v1440_v20, %v1219_v44 }
 0x17e   : > { %v1052_v34 = vpop.permute.xlu1 %1051  ;;  %v1506_v56 = vsel %vm1492_vm11, %v1473_v9, %v1254_v50 }
 0x17f   : > { %v1237_v47 = vpop.permute.xlu2 %1236  ;;  %v1359_v8 = vsel %vm1311_vm6, %v3214_v60, %v1052_v34 }
 0x180   : > { %v1392_v39 = vsel %vm1360_vm7, %v1359_v8, %v1132_v28 }
 0x183   : > { %v1289_v61 = vpop.permute.xlu0 %1288 }
 0x184   : > { %v1545_v19 = vsel %vm1525_vm12, %v1506_v56, %v1289_v61 }
 0x185   : > { %1736 = vmatmul.bf16.gmra.mxu0 %v1545_v19 }
 0x186   : > { %v1202_v38 = vpop.permute.xlu1 %1201 }
 0x187   : > { %v1307_v62 = vpop.permute.xlu2 %1306 }
 0x188   : > { %v1762_v16 = vpop.f32.mrf.mxu2 }
 0x189   : > { %v1763_v40 = vadd.f32 %v3386_v0, %v1762_v16 }
 0x18b   : > { %v1852_v23 = vadd.f32 %v1851_v42, %v1763_v40  ;;  %v1167_v2 = vpop.permute.xlu0 %1166 }
 0x18c   : > { %v1425_v27 = vsel %vm1393_vm8, %v1392_v39, %v1167_v2 }
 0x18d   : > { %v1458_v33 = vsel %vm1426_vm9, %v1425_v27, %v1202_v38  ;;  %v1898_v35 = vmax.f32 %v1852_v23, 0.0 }
 0x18e   : > { %v1036_v29 = vpop.permute.xlu1 %1035  ;;  %v1491_v60 = vsel %vm1459_vm10, %v1458_v33, %v1237_v47 }
 0x18f   : > { %v1186_v13 = vpop.permute.xlu2 %1185  ;;  %v1335_v36 = vsel %vm1311_vm6, %v3244_v21, %v1036_v29 }
 0x190   : > { %v1764_v50 = vpop.f32.mrf.mxu2 }
 0x191   : > { %v1765_v46 = vadd.f32 %v3386_v0, %v1764_v50 }
 0x192   : > { %v1722_v48 = vpop.f32.mrf.mxu0 }
 0x193   : > { %v1854_v14 = vadd.f32 %v1853_v58, %v1765_v46  ;;  %v1272_v59 = vpop.permute.xlu0 %1271  ;;  %v1723_v43 = vadd.f32 %v3386_v0, %v1722_v48 }
 0x194   : > { %v1524_v63 = vsel %vm1492_vm11, %v1491_v60, %v1272_v59 }
 0x195   : > { %v1899_v3 = vmax.f32 %v1854_v14, 0.0  ;;  %v1572_v11 = vsel %vm1525_vm12, %v1524_v63, %v1307_v62  ;;  %v1812_v54 = vadd.f32 %v3194_v51, %v1723_v43 }
 0x196   : > { %1781 = vmatmul.bf16.gmra.mxu2 %v1572_v11  ;;  %v1151_v5 = vpop.permute.xlu1 %1150 }
 0x197   : > { %v3508_v41 = vpack.c.bf16 %v1899_v3, %v1898_v35  ;;  %v1882_v57 = vmax.f32 %v1812_v54, 0.0  ;;  %v1291_v61 = vpop.permute.xlu2 %1290 }
 0x19a   : > { %v1724_v37 = vpop.f32.mrf.mxu0 }
 0x19b   : > { %v1725_v44 = vadd.f32 %v3386_v0, %v1724_v37  ;;  %v1116_v26 = vpop.permute.xlu0 %1115 }
 0x19c   : > { %v1376_v1 = vsel %vm1360_vm7, %v1335_v36, %v1116_v26 }
 0x19d   : > { %v1814_v53 = vadd.f32 %v3220_v10, %v1725_v44  ;;  %v1409_v4 = vsel %vm1393_vm8, %v1376_v1, %v1151_v5  ;;  %v1856_v10 = vpop.f32.mrf.mxu3 }
 0x19e   : > { %v1256_v20 = vpop.permute.xlu1 %1255  ;;  %v1442_v9 = vsel %vm1426_vm9, %v1409_v4, %v1186_v13 }
 0x19f   : > { %v1883_v28 = vmax.f32 %v1814_v53, 0.0  ;;  %v1153_v23 = vpop.permute.xlu2 %1152 }
 0x1a1   : > { %v3517_v34 = vpack.c.bf16 %v1883_v28, %v1882_v57 }
 0x1a3   : > { %v1221_v51 = vpop.permute.xlu0 %1220 }
 0x1a4   : > { %v1475_v56 = vsel %vm1459_vm10, %v1442_v9, %v1221_v51 }
 0x1a5   : > { %v1508_v19 = vsel %vm1492_vm11, %v1475_v56, %v1256_v20  ;;  %v1858_v27 = vpop.f32.mrf.mxu3 }
 0x1a6   : > { %v1548_v21 = vsel %vm1525_vm12, %v1508_v19, %v1291_v61  ;;  %v1118_v42 = vpop.permute.xlu1 %1117 }
 0x1a7   : > { %1741 = vmatmul.bf16.gmra.mxu0 %v1548_v21 }
 0x1a9   : > { %v1767_v47 = vpop.f32.mrf.mxu2 }
 0x1aa   : > { %v1768_v38 = vadd.f32 %v3386_v0, %v1767_v47 }
 0x1ab   : > { %v1038_v16 = vpop.permute.xlu0 %1037 }
 0x1ac   : > { %v1857_v8 = vadd.f32 %v1856_v10, %v1768_v38  ;;  %v1338_v40 = vsel %vm1311_vm6, %v3346_v55, %v1038_v16  ;;  %v1258_v55 = vpop.permute.xlu2 %1257 }
 0x1ad   : > { %v1378_v2 = vsel %vm1360_vm7, %v1338_v40, %v1118_v42  ;;  %v1861_v53 = vpop.f32.mrf.mxu3 }
 0x1ae   : > { %v1411_v29 = vsel %vm1393_vm8, %v1378_v2, %v1153_v23  ;;  %v1223_v50 = vpop.permute.xlu1 %1222  ;;  %v1900_v14 = vmax.f32 %v1857_v8, 0.0 }
 0x1b1   : > { %v1769_v39 = vpop.f32.mrf.mxu2 }
 0x1b2   : > { %v1770_v62 = vadd.f32 %v3386_v0, %v1769_v39 }
 0x1b3   : > { %v1188_v33 = vpop.permute.xlu0 %1187 }
 0x1b4   : > { %v1859_v58 = vadd.f32 %v1858_v27, %v1770_v62  ;;  %v1727_v46 = vpop.f32.mrf.mxu0  ;;  %v1444_v48 = vsel %vm1426_vm9, %v1411_v29, %v1188_v33 }
 0x1b5   : > { %v1477_v59 = vsel %vm1459_vm10, %v1444_v48, %v1223_v50  ;;  %v1728_v35 = vadd.f32 %v3386_v0, %v1727_v46  ;;  %v1863_v57 = vpop.f32.mrf.mxu3 }
 0x1b6   : > { %v1901_v60 = vmax.f32 %v1859_v58, 0.0  ;;  %v1510_v3 = vsel %vm1492_vm11, %v1477_v59, %v1258_v55 }
 0x1b7   : > { %v1817_v13 = vadd.f32 %v3239_v7, %v1728_v35 }
 0x1b8   : > { %v3531_v63 = vpack.c.bf16 %v1901_v60, %v1900_v14 }
 0x1b9   : > { %v1884_v44 = vmax.f32 %v1817_v13, 0.0 }
 0x1bb   : > { %v1293_v11 = vpop.permute.xlu0 %1292 }
 0x1bc   : > { %v1729_v43 = vpop.f32.mrf.mxu0  ;;  %v1551_v5 = vsel %vm1525_vm12, %v1510_v3, %v1293_v11 }
 0x1bd   : > { %v1730_v37 = vadd.f32 %v3386_v0, %v1729_v43  ;;  %1746 = vmatmul.bf16.gmra.mxu0 %v1551_v5  ;;  %v1866_v20 = vpop.f32.mrf.mxu3 }
 0x1bf   : > { %v1819_v54 = vadd.f32 %v3261_v31, %v1730_v37 }
 0x1c1   : > { %v1885_v26 = vmax.f32 %v1819_v54, 0.0 }
 0x1c3   : > { %v3539_v36 = vpack.c.bf16 %v1885_v26, %v1884_v44 }
 0x1c5   : > { %v1868_v61 = vpop.f32.mrf.mxu3 }
 0x1cb   : > { %v1772_v1 = vpop.f32.mrf.mxu2 }
 0x1cc   : > { %v1773_v14 = vadd.f32 %v3386_v0, %v1772_v1 }
 0x1ce   : > { %v1862_v37 = vadd.f32 %v1861_v53, %v1773_v14 }
 0x1d3   : > { %v1774_v28 = vpop.f32.mrf.mxu2 }
 0x1d4   : > { %v1775_v58 = vadd.f32 %v3386_v0, %v1774_v28 }
 0x1d6   : > { %v1864_v11 = vadd.f32 %v1863_v57, %v1775_v58 }
 0x1d8   : > { %v1903_v1 = vmax.f32 %v1864_v11, 0.0 }
 0x1db   : > { %v1732_v4 = vpop.f32.mrf.mxu0 }
 0x1dc   : > { %v1733_v53 = vadd.f32 %v3386_v0, %v1732_v4 }
 0x1e3   : > { %v1734_v51 = vpop.f32.mrf.mxu0 }
 0x1e4   : > { %v1871_v19 = vpop.f32.mrf.mxu3  ;;  %v1735_v57 = vadd.f32 %v3386_v0, %v1734_v51 }
 0x1ec   : > { %v1873_v42 = vpop.f32.mrf.mxu3 }
 0x1f8   : > { %v1777_v9 = vpop.f32.mrf.mxu2 }
 0x1f9   : > { %v1778_v40 = vadd.f32 %v3386_v0, %v1777_v9  ;;  %v1902_v9 = vmax.f32 %v1862_v37, 0.0 }
 0x1fb   : > { %v1867_v62 = vadd.f32 %v1866_v20, %v1778_v40 }
 0x1fd   : > { %v1904_v60 = vmax.f32 %v1867_v62, 0.0 }
 0x200   : > { %v1779_v56 = vpop.f32.mrf.mxu2 }
 0x201   : > { %v1780_v38 = vadd.f32 %v3386_v0, %v1779_v56 }
 0x202   : > { %v1737_v7 = vpop.f32.mrf.mxu0 }
 0x203   : > { %v1869_v39 = vadd.f32 %v1868_v61, %v1780_v38  ;;  %v1738_v5 = vadd.f32 %v3386_v0, %v1737_v7  ;;  %v1824_v7 = vadd.f32 %v3294_v22, %v1735_v57  ;;  %v1980_v22 = vsel %vm1311_vm6, %v3508_v41, 0  ;;  %v1927_v41 = vld [vmem:[%s3655_s4 + $0x8] sm:$0x7f] }
 0x205   : > { %v1905_v46 = vmax.f32 %v1869_v39, 0.0  ;;  %v1827_v20 = vadd.f32 %v3306_v32, %v1738_v5  ;;  %v1822_v32 = vadd.f32 %v3274_v52, %v1733_v53  ;;  %v1959_v52 = vsel %vm1311_vm6, %v3539_v36, 0  ;;  %v1926_v36 = vld [vmem:[%s3655_s4] sm:$0xff] }
 0x206   : > { %v2476_v39 = vmov 0  }
 0x207   : > { %v1924_v43 = vpack.c.bf16 %v1905_v46, %v1904_v60  ;;  %v1886_v51 = vmax.f32 %v1822_v32, 0.0  ;;  %2448 = vset.pattern.permute.xlu1 %v2476_v39  ;;  %2449 = vset.pattern.permute.xlu2 %v2476_v39  ;;  %v3608_v46 = vld [vmem:[%s3656_s5] sm:$0xff] }
 0x208   : > { %1935 = vperm.xlu1 %2448, %v1927_v41   ;;  %1930 = vperm.xlu2 %2449, %v1926_v36   ;;  %v2030_v14 = vrot.slane %v3608_v46, 2 }
 0x209   : > { %v1989_v28 = vsel %vm1311_vm6, %v1924_v43, 0  ;;  %2450 = vset.pattern.permute.xlu0 %v2476_v39 }
 0x20a   : > { %v1739_v10 = vpop.f32.mrf.mxu0  ;;  %v2034_v5 = vsub.f32 %v3608_v46, %v2030_v14 }
 0x20b   : > { %v1740_v55 = vadd.f32 %v3386_v0, %v1739_v10  ;;  %v1887_v10 = vmax.f32 %v1824_v7, 0.0 }
 0x20c   : > { %v2105_v39 = vrot.slane %v2034_v5, 5 }
 0x20d   : > { %v1829_v54 = vadd.f32 %v3325_v6, %v1740_v55  ;;  %v1888_v6 = vmax.f32 %v1827_v20, 0.0  ;;  %v2038_v20 = vmul.f32 0.5, %v2034_v5 }
 0x20f   : > { %v1889_v61 = vmax.f32 %v1829_v54, 0.0 }
 0x219   : > { %v1782_v21 = vpop.f32.mrf.mxu2 }
 0x21a   : > { %v1783_v31 = vadd.f32 %v3386_v0, %v1782_v21 }
 0x21c   : > { %v1872_v16 = vadd.f32 %v1871_v19, %v1783_v31  ;;  %v1916_v19 = vpack.c.bf16 %v1889_v61, %v1888_v6 }
 0x21e   : > { %v1906_v27 = vmax.f32 %v1872_v16, 0.0  ;;  %v1965_v31 = vsel %vm1311_vm6, %v1916_v19, 0 }
 0x221   : > { %v1784_v47 = vpop.f32.mrf.mxu2 }
 0x222   : > { %v1785_v8 = vadd.f32 %v3386_v0, %v1784_v47  ;;  %v1915_v47 = vpack.c.bf16 %v1887_v10, %v1886_v51  ;;  %v2047_v10 = vrot.slane %v2038_v20, 6 }
 0x224   : > { %v1874_v23 = vadd.f32 %v1873_v42, %v1785_v8  ;;  %v1742_v2 = vpop.f32.mrf.mxu0  ;;  %v1983_v42 = vsel %vm1311_vm6, %v3531_v63, 0  ;;  %v1962_v4 = vsel %vm1311_vm6, %v1915_v47, 0  ;;  %v1977_v8 = vsel %vm1311_vm6, %v3468_v12, 0 }
 0x225   : > { %v1743_v50 = vadd.f32 %v3386_v0, %v1742_v2 }
 0x226   : > { %v1907_v29 = vmax.f32 %v1874_v23, 0.0  ;;  %v1956_v23 = vsel %vm1311_vm6, %v3517_v34, 0 }
 0x227   : > { %v1832_v35 = vadd.f32 %v3356_v15, %v1743_v50 }
 0x228   : > { %v1925_v33 = vpack.c.bf16 %v1907_v29, %v1906_v27  ;;  %v1953_v29 = vsel %vm1311_vm6, %v3490_v49, 0  ;;  %v2025_v49 = vld [vmem:[%s3656_s5 + $0x8] sm:$0xff] }
 0x229   : > { %v1890_v44 = vmax.f32 %v1832_v35, 0.0  ;;  %v2031_v50 = vrot.slane %v2025_v49, 2 }
 0x22a   : > { %v1992_v48 = vsel %vm1311_vm6, %v1925_v33, 0  ;;  %v2421_v33 = vld [vmem:[%s3654_s3] sm:$0xff] }
 0x22b   : > { %2008 = vmatpush.bf16.xpose.msrb.mxu3 %v1992_v48  ;;  %v2035_v48 = vsub.f32 %v2025_v49, %v2031_v50 }
 0x22c   : > { %v1744_v59 = vpop.f32.mrf.mxu0 }
 0x22d   : > { %v1745_v3 = vadd.f32 %v3386_v0, %v1744_v59  ;;  %v2026_v59 = vld [vmem:[%s3656_s5 + $0x10] sm:$0xf]  ;;  %v2039_v35 = vmul.f32 0.5, %v2035_v48  ;;  %v2108_v61 = vrot.slane %v2035_v48, 5 }
 0x22e   : > { %v3614_v11 = vsub.f32 %v2026_v59, %v2030_v14 }
 0x22f   : > { %v1834_v13 = vadd.f32 %v3371_v18, %v1745_v3  ;;  %v1923_v18 = vpack.c.bf16 %v1903_v1, %v1902_v9  ;;  %v2050_v37 = vrot.slane %v2039_v35, 6  ;;  %v2069_v9 = vrot.slane %v2035_v48, 3 }
 0x231   : > { %v1891_v26 = vmax.f32 %v1834_v13, 0.0  ;;  %v1986_v21 = vsel %vm1311_vm6, %v1923_v18, 0 }
 0x233   : > { %2009 = vmatpush.bf16.xpose.msrb.mxu3 %v1989_v28  ;;  %v1917_v15 = vpack.c.bf16 %v1891_v26, %v1890_v44  ;;  %v2040_v26 = vmul.f32 0.5, %v3614_v11 }
 0x235   : > { %v1968_v56 = vsel %vm1311_vm6, %v1917_v15, 0 }
 0x236   : > { %1994 = vmatpush.bf16.xpose.msrb.mxu2 %v1968_v56 }
 0x23a   : > { %v1747_v38 = vpop.f32.mrf.mxu0 }
 0x23b   : > { %2010 = vmatpush.bf16.xpose.msrb.mxu3 %v1986_v21  ;;  %v1748_v40 = vadd.f32 %v3386_v0, %v1747_v38  ;;  %v2048_v21 = vrot.slane %v2040_v26, 6 }
 0x23d   : > { %v1837_v2 = vadd.f32 %v3392_v25, %v1748_v40  ;;  %v2059_v40 = vadd.f32 %v2048_v21, %v3608_v46 }
 0x23e   : > { %1995 = vmatpush.bf16.xpose.msrb.mxu2 %v1965_v31 }
 0x23f   : > { %v1892_v34 = vmax.f32 %v1837_v2, 0.0 }
 0x242   : > { %v1749_v16 = vpop.f32.mrf.mxu0 }
 0x243   : > { %2011 = vmatpush.bf16.xpose.msrb.mxu3 %v1983_v42  ;;  %v1750_v63 = vadd.f32 %v3386_v0, %v1749_v16  ;;  %v1974_v0 = vsel %vm1311_vm6, %v3443_v24, 0  ;;  %v1947_v24 = vsel %vm1311_vm6, %v3413_v30, 0 }
 0x245   : > { %v1839_v12 = vadd.f32 %v3407_v17, %v1750_v63  ;;  %v1950_v17 = vsel %vm1311_vm6, %v3455_v45, 0  ;;  %v2027_v45 = vld [vmem:[%s3656_s5 + $0x18] sm:$0xf]  ;;  %v2067_v63 = vrot.slane %v3614_v11, 3 }
 0x246   : > { %1996 = vmatpush.bf16.xpose.msrb.mxu2 %v1962_v4  ;;  %v2037_v30 = vsub.f32 %v2027_v45, %v2031_v50 }
 0x247   : > { %v1893_v27 = vmax.f32 %v1839_v12, 0.0  ;;  %v2066_v12 = vrot.slane %v2034_v5, 3 }
 0x248   : > { %v2041_v55 = vmul.f32 0.5, %v2037_v30  ;;  %v2070_v28 = vrot.slane %v2037_v30, 3  ;;  %v2109_v56 = vrot.slane %v2037_v30, 5 }
 0x249   : > { %v1918_v62 = vpack.c.bf16 %v1893_v27, %v1892_v34  ;;  %v2068_v48 = vsel %vm2065_vm14, %v2066_v12, %v2067_v63 }
 0x24a   : > { %v2051_v13 = vrot.slane %v2041_v55, 6  ;;  %v2071_v7 = vsel %vm2065_vm14, %v2069_v9, %v2070_v28  ;;  %v2110_v32 = vsel %vm742_vm0, %v2108_v61, %v2109_v56 }
 0x24b   : > { %2012 = vmatpush.bf16.xpose.msrb.mxu3 %v1980_v22  ;;  %v1971_v25 = vsel %vm1311_vm6, %v1918_v62, 0 }
 0x24c   : > { %v2052_v15 = vsel %vm2046_vm13, %v2050_v37, %v2051_v13  ;;  %v2060_v18 = vadd.f32 %v2051_v13, %v2025_v49 }
 0x24d   : > { %v2056_v53 = vadd.f32 %v2052_v15, %v2025_v49 }
 0x24e   : > { %1997 = vmatpush.bf16.xpose.msrb.mxu2 %v1959_v52  ;;  %v2093_v47 = vrot.slane %v2060_v18, 5 }
 0x24f   : > { %v2079_v42 = vrot.slane %v2056_v53, 5 }
 0x253   : > { %2013 = vmatpush.bf16.xpose.msrb.mxu3 %v1977_v8 }
 0x256   : > { %1998 = vmatpush.bf16.xpose.msrb.mxu2 %v1956_v23  ;;  %v2049_v23 = vsel %vm2046_vm13, %v2047_v10, %v2048_v21 }
 0x25b   : > { %2014 = vmatpush.bf16.xpose.msrb.mxu3 %v1974_v0  ;;  %v2106_v0 = vrot.slane %v3614_v11, 5 }
 0x25e   : > { %1999 = vmatpush.bf16.xpose.msrb.mxu2 %v1953_v29 }
 0x262   : > { %v1931_v57 = vpop.permute.xlu2 %1930 }
 0x263   : > { %2015 = vmatpush.bf16.xpose.msrb.mxu3 %v1971_v25 }
 0x266   : > { %2000 = vmatpush.bf16.xpose.msrb.mxu2 %v1950_v17  ;;  %v2092_v17 = vrot.slane %v2059_v40, 5 }
 0x26a   : > { %2390 = vmatmul.msk.bf16.vlgmr.msrb.gmra.mxu3 %vm1311_vm6, %v2421_v33 }
 0x26e   : > { %2001 = vmatpush.bf16.xpose.msrb.mxu2 %v1947_v24 }
 0x275   : > { %2389 = vmatmul.msk.bf16.vlgmr.msrb.gmra.mxu2 %vm1311_vm6, %v2421_v33  ;;  %v2055_v33 = vadd.f32 %v2049_v23, %v3608_v46 }
 0x277   : > { %v2078_v5 = vrot.slane %v2055_v33, 5 }
 0x27a   : > { %v1936_v60 = vpop.permute.xlu1 %1935 }
 0x2ed   : > { %v2017_v58 = vpop.f32.mrf.mxu3 }
 0x2ee   : > { %v2018_v6 = vadd.f32 %v2017_v58, %v1931_v57  ;;  %v2107_v58 = vsel %vm742_vm0, %v2105_v39, %v2106_v0 }
 0x2f0   : > { %v2075_v4 = vmul.f32 %v2071_v7, %v2018_v6  ;;  %v2087_v38 = vmul.f32 %v2070_v28, %v2018_v6 }
 0x2f2   : > { %v2083_v34 = vadd.f32 %v2079_v42, %v2075_v4  ;;  %v2097_v27 = vadd.f32 %v2093_v47, %v2087_v38 }
 0x2f5   : > { %v2019_v3 = vpop.f32.mrf.mxu3 }
 0x2f6   : > { %v2020_v43 = vadd.f32 %v2019_v3, %v1936_v60 }
 0x2f8   : > { %v2003_v54 = vpop.f32.mrf.mxu2  ;;  %v2023_v44 = vmin.f32 %v2020_v43, 4.1351666  ;;  %v2089_v52 = vmul.f32 %v2070_v28, %v2020_v43 }
 0x2f9   : > { %v2004_v49 = vadd.f32 %v2003_v54, %v1931_v57 }
 0x2fa   : > { %v2102_v1 = vmul.f32 1.442695, %v2023_v44  ;;  %v2099_v29 = vadd.f32 %v2093_v47, %v2089_v52 }
 0x2fb   : > { %v2074_v13 = vmul.f32 %v2068_v48, %v2004_v49  ;;  %v2086_v37 = vmul.f32 %v2067_v63, %v2004_v49 }
 0x2fc   : > { %2452 = vpow2.f32 %v2102_v1 }
 0x2fd   : > { %v2082_v9 = vadd.f32 %v2078_v5, %v2074_v13 }
 0x300   : > { %v2005_v19 = vpop.f32.mrf.mxu2 }
 0x301   : > { %v2006_v31 = vadd.f32 %v2005_v19, %v1936_v60 }
 0x302   : > { %v2453_v51 = vpop.eup %2452 }
 0x303   : > { %v2022_v22 = vmin.f32 %v2006_v31, 4.1351666  ;;  %v2114_v16 = vmul.f32 %v2453_v51, %v2110_v32  ;;  %v2118_v8 = vmul.f32 %v2453_v51, %v2109_v56  ;;  %v2088_v43 = vmul.f32 %v2067_v63, %v2006_v31 }
 0x304   : > { %v2096_v56 = vadd.f32 %v2092_v17, %v2086_v37 }
 0x305   : > { %v2100_v41 = vmul.f32 1.442695, %v2022_v22  ;;  %v2120_v36 = vmul.f32 0.5, %v2114_v16  ;;  %v2130_v2 = vmul.f32 0.5, %v2118_v8  ;;  %v2098_v57 = vadd.f32 %v2092_v17, %v2088_v43 }
 0x307   : > { %2454 = vpow2.f32 %v2100_v41  ;;  %v2134_v62 = vrot.slane %v2130_v2, 6  ;;  %v2124_v25 = vrot.slane %v2120_v36, 6 }
 0x309   : > { %v2146_v24 = vadd.f32 %v2134_v62, %v2099_v29  ;;  %v2128_v50 = vsub.f32 %v2083_v34, %v2124_v25  ;;  %v2138_v45 = vsub.f32 %v2097_v27, %v2134_v62  ;;  %v2142_v30 = vadd.f32 %v2124_v25, %v2083_v34 }
 0x30a   : > { %v2144_v14 = vadd.f32 %v2134_v62, %v2097_v27  ;;  %v2140_v59 = vsub.f32 %v2099_v29, %v2134_v62 }
 0x30b   : > { %v2162_v60 = vrot.slane %v2146_v24, 2  ;;  %v2167_v46 = vsel %vm742_vm0, %v2018_v6, %v2128_v50  ;;  %v2150_v55 = vrot.slane %v2142_v30, 2 }
 0x30c   : > { %v2161_v35 = vrot.slane %v2144_v14, 2  ;;  %v2169_v3 = vsel %vm2157_vm15, %v2167_v46, %v2138_v45 }
 0x30d   : > { %v2455_v11 = vpop.eup %2454  ;;  %2177 = vst [vmem:[%s3631_s27 + $0x8] sm:$0xff] %v2169_v3  ;;  %v2172_v1 = vsel %vm2170_vm1, %v2140_v59, %v2150_v55 }
 0x30e   : > { %v2113_v54 = vmul.f32 %v2455_v11, %v2107_v58  ;;  %v2117_v44 = vmul.f32 %v2455_v11, %v2106_v0  ;;  %v2163_v26 = vsel %vm2157_vm15, %v2161_v35, %v2162_v60 }
 0x30f   : > { %v2175_v28 = vsel %vm2173_vm2, %v2172_v1, %v2163_v26 }
 0x310   : > { %v2119_v20 = vmul.f32 0.5, %v2113_v54  ;;  %v2129_v15 = vmul.f32 0.5, %v2117_v44  ;;  %2179 = vst [vmem:[%s3631_s27 + $0x18] sm:$0x7f] %v2175_v28 }
 0x312   : > { %v2133_v61 = vrot.slane %v2129_v15, 6  ;;  %v2123_v18 = vrot.slane %v2119_v20, 6 }
 0x314   : > { %v2145_v53 = vadd.f32 %v2133_v61, %v2098_v57  ;;  %v2127_v6 = vsub.f32 %v2082_v9, %v2123_v18  ;;  %v2137_v7 = vsub.f32 %v2096_v56, %v2133_v61  ;;  %v2141_v19 = vadd.f32 %v2123_v18, %v2082_v9 }
 0x315   : > { %v2143_v21 = vadd.f32 %v2133_v61, %v2096_v56  ;;  %v2139_v31 = vsub.f32 %v2098_v57, %v2133_v61 }
 0x316   : > { %v2159_v32 = vrot.slane %v2145_v53, 2  ;;  %v2166_v10 = vsel %vm742_vm0, %v2004_v49, %v2127_v6  ;;  %v2149_v51 = vrot.slane %v2141_v19, 2 }
 0x317   : > { %v2158_v47 = vrot.slane %v2143_v21, 2  ;;  %v2168_v42 = vsel %vm2157_vm15, %v2166_v10, %v2137_v7 }
 0x318   : > { %2176 = vst [vmem:[%s3631_s27] sm:$0xff] %v2168_v42  ;;  %v2171_v38 = vsel %vm2170_vm1, %v2139_v31, %v2149_v51 }
 0x319   : > { %v2160_v4 = vsel %vm2157_vm15, %v2158_v47, %v2159_v32 }
 0x31a   : > { %v2174_v22 = vsel %vm2173_vm2, %v2171_v38, %v2160_v4 }
 0x31b   : > { %2178 = vst [vmem:[%s3631_s27 + $0x10] sm:$0x7f] %v2174_v22 }
 0x31c PF: > { %s16_s21 = sadd.s32 1, %s2467_s21  }
 0x31d   : > { %p13_p4 = scmp.ge.s32.totalorder %s16_s21, 4  }
 0x31f   :  { %15 = sbr.rel (!%p13_p4) target bundleno = 1 (0x1), region = 74 }

</bundles_post_ra>
